<compile_context>
chip_gen: v6e
topology: v6e:2x2x1
jax: 0.10.0
libtpu: 0.0.40
codegen_flags: <defaults>
</compile_context>

<pallas_src>
import functools
from types import SimpleNamespace

import jax
import jax.numpy as jnp
from jax import lax
from jax.experimental import pallas as pl
from jax.experimental.pallas import tpu as pltpu


# ----------------------------------------------------------------------------
# Small helpers (wrapper-side, plain JAX)
# ----------------------------------------------------------------------------
def block_diag(mats, dtype):
    """Block-diagonal stack of 2-D matrices."""
    rows = sum(m.shape[0] for m in mats)
    cols = sum(m.shape[1] for m in mats)
    out = jnp.zeros((rows, cols), dtype)
    r = c = 0
    for m in mats:
        out = out.at[r:r + m.shape[0], c:c + m.shape[1]].set(m.astype(dtype))
        r += m.shape[0]
        c += m.shape[1]
    return out


# ----------------------------------------------------------------------------
# Pallas kernels
# ----------------------------------------------------------------------------
def _mm(a, w):
    """bf16 MXU matmul with f32 accumulation, contracting a[-1] with w[0]."""
    return lax.dot_general(a.astype(jnp.bfloat16), w.astype(jnp.bfloat16),
                           (((1,), (0,)), ((), ())),
                           preferred_element_type=jnp.float32)


def _mm_tt(a, b):
    """a @ b.T without an explicit transpose (contract last axes of both)."""
    return lax.dot_general(a.astype(jnp.bfloat16), b.astype(jnp.bfloat16),
                           (((1,), (1,)), ((), ())),
                           preferred_element_type=jnp.float32)


def _proj_kernel(x_ref, w_ref, b_ref, o_ref):
    # Fused fc1/fc2/fc3: x is [utt|aud|vis] concat, w is block-diagonal.
    y = _mm(x_ref[...], w_ref[...]) + b_ref[...]
    o_ref[...] = jnp.maximum(y, 0.0).astype(o_ref.dtype)


def _layer_kernel(x_ref, y_ref, sb_ref, tb_ref, wsem_ref, wstr_ref, w2_ref,
                  aff_ref, o_ref, *, hidden):
    """One full MMGATs GNN layer for one batch element.

    x_ref : (1, N, 2H)  = [x_sem | x_str]
    y_ref : (1, N, 4H)  = [y_sem_audio | y_sem_visual | y_str_audio | y_str_visual]
    sb/tb : (1, N, N)   additive adjacency biases (0 / -1e9)
    wsem  : (H, 2H)     = [spk_w | mspk_w]        (bf16)
    wstr  : (H, 2H)     = [dis_w | mdis_w]        (bf16)
    w2    : (4H, 4H)    block-diag [w2_sem, w2_sem, w2_str, w2_str]   (bf16)
    aff   : (6H, 6H)    block-diag [aff1, aff2, aff7, aff8, aff9, aff10] (bf16)
    o_ref : (1, N, 6H)  = [sem, sem_audio, sem_visual, str, str_audio, str_visual]
    """
    H = hidden
    x = x_ref[0]             # (N, 2H) f32
    y = y_ref[0]             # (N, 4H) f32
    sem_bias = sb_ref[0]     # (N, N)  f32
    str_bias = tb_ref[0]

    x_sem = x[:, :H]
    x_str = x[:, H:]

    # TODO(synk): stand-in for MoEGAT -- masked graph attention + projection.
    h_sem = _mm(x_sem, wsem_ref[...])        # (N, 2H): [h_spk | h_mspk]
    h_str = _mm(x_str, wstr_ref[...])        # (N, 2H): [h_dis | h_mdis]
    h_spk, h_mspk = h_sem[:, :H], h_sem[:, H:]
    h_dis, h_mdis = h_str[:, :H], h_str[:, H:]

    def gat_attn(h, bias):
        e = _mm_tt(h, h)                                  # (N, N)
        e = jnp.where(e > 0.0, e, 0.2 * e)                # leaky relu (f32 VPU)
        e = e + bias                                      # hoisted adjacency mask
        e = e - jnp.max(e, axis=-1, keepdims=True)
        p = jnp.exp(e)
        a = p * pl.reciprocal(jnp.sum(p, axis=-1, keepdims=True), approx=True)
        return _mm(a, h)                                  # (N, H)

    agg_spk = gat_attn(h_spk, sem_bias)
    agg_dis = gat_attn(h_dis, str_bias)
    agg_mspk = gat_attn(h_mspk, sem_bias)                 # computed once, reused
    agg_mdis = gat_attn(h_mdis, str_bias)                 # computed once, reused

    # Second-modality projections in ONE lane-dense matmul via block-diag w2:
    # yp = [y_sem_a@w2_sem | y_sem_v@w2_sem | y_str_a@w2_str | y_str_v@w2_str]
    yp = _mm(y, w2_ref[...])                              # (N, 4H)

    g1 = jnp.maximum(agg_spk, 0.0)                        # H1_semantic
    g2 = jnp.maximum(agg_dis, 0.0)                        # H1_structure
    g3 = jnp.maximum(agg_mspk + yp[:, 0:H], 0.0)          # H1_Multi_sem_text_audio
    g4 = jnp.maximum(agg_mspk + yp[:, H:2 * H], 0.0)      # H1_Multi_sem_text_visual
    g5 = jnp.maximum(agg_mdis + yp[:, 2 * H:3 * H], 0.0)  # H1_Multi_stu_text_audio
    g6 = jnp.maximum(agg_mdis + yp[:, 3 * H:], 0.0)       # H1_Multi_stu_text_visual

    # All six cross-attentions:  softmax((Ha @ aff_i) @ Hb^T) @ Hb.
    # Ha @ aff_i for all i fused into one (N, 6H) @ (6H, 6H) block-diag matmul.
    ha = jnp.concatenate([g1, g2, g3, g5, g4, g6], axis=-1)   # (N, 6H)
    q = _mm(ha, aff_ref[...])                                  # (N, 6H)
    hbs = [g2, g1, g5, g3, g6, g4]
    news = []
    for i in range(6):
        qi = q[:, i * H:(i + 1) * H]
        hb = hbs[i]
        s = _mm_tt(qi, hb)                                     # (N, N)
        s = s - jnp.max(s, axis=-1, keepdims=True)
        p = jnp.exp(s)
        a = p * pl.reciprocal(jnp.sum(p, axis=-1, keepdims=True), approx=True)
        news.append(_mm(a, hb))                                # (N, H)

    # news: [sem_new, str_new, audio_sem_new, audio_str_new, vis_sem_new, vis_str_new]
    out = jnp.concatenate([news[0], news[2], news[4],
                           news[1], news[3], news[5]], axis=-1)   # (N, 6H)
    o_ref[0] = out.astype(o_ref.dtype)


def _mlp_kernel(*refs, n_hidden):
    """out_mlp with the H_cat concat fused in.

    refs = (gat_slab, raw_slab, w0a, w0b, b0, [w_i, b_i]*, wf_pad, bf_pad, o_ref)
    """
    gat_ref, raw_ref = refs[0], refs[1]
    o_ref = refs[-1]
    wr = refs[2:-1]

    x = _mm(gat_ref[...], wr[0][...]) + _mm(raw_ref[...], wr[1][...]) + wr[2][...]
    x = jnp.maximum(x, 0.0)
    idx = 3
    for _ in range(n_hidden - 1):
        x = jnp.maximum(_mm(x, wr[idx][...]) + wr[idx + 1][...], 0.0)
        idx += 2
    o = _mm(x, wr[idx][...]) + wr[idx + 1][...]       # final layer (lane-padded)
    o_ref[...] = o.astype(o_ref.dtype)


# ----------------------------------------------------------------------------
# Pallas wrappers
# ----------------------------------------------------------------------------
def fused_projection(x2d, w_blk, b_cat):
    M = x2d.shape[0]
    D = w_blk.shape[1]
    return pl.pallas_call(
        _proj_kernel,
        out_shape=jax.ShapeDtypeStruct((M, D), jnp.float32),
    )(x2d, w_blk, b_cat.reshape(1, D))


def gat_xattn_layer(x_pack, y_pack, sem_bias, str_bias, wsem, wstr, w2blk,
                    affblk, *, hidden):
    B, N, _ = x_pack.shape
    H = hidden
    kernel = functools.partial(_layer_kernel, hidden=H)
    return pl.pallas_call(
        kernel,
        out_shape=jax.ShapeDtypeStruct((B, N, 6 * H), jnp.float32),
        grid=(B,),
        in_specs=[
            pl.BlockSpec((1, N, 2 * H), lambda b: (b, 0, 0)),
            pl.BlockSpec((1, N, 4 * H), lambda b: (b, 0, 0)),
            pl.BlockSpec((1, N, N), lambda b: (b, 0, 0)),
            pl.BlockSpec((1, N, N), lambda b: (b, 0, 0)),
            pl.BlockSpec((H, 2 * H), lambda b: (0, 0)),
            pl.BlockSpec((H, 2 * H), lambda b: (0, 0)),
            pl.BlockSpec((4 * H, 4 * H), lambda b: (0, 0)),
            pl.BlockSpec((6 * H, 6 * H), lambda b: (0, 0)),
        ],
        out_specs=pl.BlockSpec((1, N, 6 * H), lambda b: (b, 0, 0)),
        compiler_params=pltpu.CompilerParams(dimension_semantics=("parallel",)),
    )(x_pack, y_pack, sem_bias, str_bias, wsem, wstr, w2blk, affblk)


def mlp_forward(gat2d, raw2d, w_list, b_list):
    M, Kg = gat2d.shape
    n_hidden = len(w_list) - 1
    num_class = w_list[-1].shape[1]
    cpad = ((num_class + 127) // 128) * 128

    call_args = [gat2d, raw2d,
                 w_list[0][:Kg].astype(jnp.bfloat16),         # rows for GAT slab
                 w_list[0][Kg:].astype(jnp.bfloat16),          # rows for raw feats
                 b_list[0].reshape(1, -1)]
    for i in range(1, n_hidden):
        call_args += [w_list[i].astype(jnp.bfloat16), b_list[i].reshape(1, -1)]
    wf = jnp.zeros((w_list[-1].shape[0], cpad), jnp.float32)
    wf = wf.at[:, :num_class].set(w_list[-1]).astype(jnp.bfloat16)
    bf = jnp.zeros((1, cpad), jnp.float32).at[:, :num_class].set(
        b_list[-1].reshape(1, -1))
    call_args += [wf, bf]

    kernel = functools.partial(_mlp_kernel, n_hidden=n_hidden)
    out = pl.pallas_call(
        kernel,
        out_shape=jax.ShapeDtypeStruct((M, cpad), jnp.float32),
    )(*call_args)
    return out[:, :num_class]


# ----------------------------------------------------------------------------
# Parameter construction (deterministic, in-script)
# ----------------------------------------------------------------------------
def xavier_uniform(key, shape, gain=1.0):
    fan_in, fan_out = shape[0], shape[1]
    a = gain * jnp.sqrt(6.0 / (fan_in + fan_out))
    return jax.random.uniform(key, shape, jnp.float32, -a, a)


def init_params(key, args, num_class):
    keys = iter(jax.random.split(key, 128))
    p = {}
    p["fc1_w"] = xavier_uniform(next(keys), (args.emb_dim, args.hidden_dim))
    p["fc1_b"] = jnp.zeros((args.hidden_dim,), jnp.float32)
    p["fc2_w"] = xavier_uniform(next(keys), (args.audio_emb_dim, args.hidden_dim))
    p["fc2_b"] = jnp.zeros((args.hidden_dim,), jnp.float32)
    p["fc3_w"] = xavier_uniform(next(keys), (args.visual_emb_dim, args.hidden_dim))
    p["fc3_b"] = jnp.zeros((args.hidden_dim,), jnp.float32)
    for name in ["affine1", "affine2", "affine7", "affine8", "affine9", "affine10"]:
        p[name] = xavier_uniform(next(keys), (args.hidden_dim, args.hidden_dim),
                                 gain=1.414)
    H = args.hidden_dim
    p["spk"], p["dis"] = [], []
    p["mspk_w"], p["mspk_w2"] = [], []
    p["mdis_w"], p["mdis_w2"] = [], []
    for _ in range(args.gnn_layers):
        p["spk"].append(xavier_uniform(next(keys), (H, H)))
        p["dis"].append(xavier_uniform(next(keys), (H, H)))
        p["mspk_w"].append(xavier_uniform(next(keys), (H, H)))
        p["mspk_w2"].append(xavier_uniform(next(keys), (H, H)))
        p["mdis_w"].append(xavier_uniform(next(keys), (H, H)))
        p["mdis_w2"].append(xavier_uniform(next(keys), (H, H)))
    in_dim = H * 6 + args.emb_dim + args.audio_emb_dim + args.visual_emb_dim
    mlp_dims = [in_dim, H] + [H] * (args.mlp_layers - 1) + [num_class]
    p["mlp_w"], p["mlp_b"] = [], []
    for d_in, d_out in zip(mlp_dims[:-1], mlp_dims[1:]):
        p["mlp_w"].append(xavier_uniform(next(keys), (d_in, d_out)))
        p["mlp_b"].append(jnp.zeros((d_out,), jnp.float32))
    return p


# ----------------------------------------------------------------------------
# Forward pass (mirrors MMGATs.forward)
# ----------------------------------------------------------------------------
def mmgats_forward(params, utt, aud, vis, semantic_adj, structure_adj, *, args):
    B, N, _ = utt.shape
    H = args.hidden_dim
    NEG = jnp.float32(-1e9)

    # Hoisted adjacency preprocessing: additive mask bias, computed once.
    sem_bias = jnp.where(semantic_adj > 0, 0.0, NEG).astype(jnp.float32)
    str_bias = jnp.where(structure_adj > 0, 0.0, NEG).astype(jnp.float32)

    # Fused fc1/fc2/fc3 projection (block-diagonal weights, one kernel).
    raw = jnp.concatenate([utt, aud, vis], axis=-1)                 # (B, N, Draw)
    w_proj = block_diag([params["fc1_w"], params["fc2_w"], params["fc3_w"]],
                        jnp.bfloat16)
    b_proj = jnp.concatenate([params["fc1_b"], params["fc2_b"], params["fc3_b"]])
    h0 = fused_projection(raw.reshape(B * N, -1), w_proj, b_proj)
    h0 = h0.reshape(B, N, 3 * H)
    h0_t, h0_a, h0_v = h0[..., :H], h0[..., H:2 * H], h0[..., 2 * H:]

    # Shared (layer-independent) cross-attention affines, block-diag stacked.
    aff_blk = block_diag([params["affine1"], params["affine2"], params["affine7"],
                          params["affine8"], params["affine9"], params["affine10"]],
                         jnp.bfloat16)

    diff_loss = jnp.float32(0.0)    # args.use_diff_loss == False
    nce_loss = jnp.float32(0.0)     # args.use_nce_loss == False
    moe_lb_loss = jnp.float32(0.0)  # args.use_moe_lb_loss == False

    # Layer 0 input packing (lane-dense: 64- / 128-wide last dims).
    x_pack = jnp.concatenate([h0_t, h0_t], axis=-1)                  # (B, N, 2H)
    y_pack = jnp.concatenate([h0_a, h0_v, h0_a, h0_v], axis=-1)      # (B, N, 4H)

    slab = None
    for l in range(args.gnn_layers):
        if l > 0:
            x_sem = slab[..., 0:H]
            x_str = slab[..., 3 * H:4 * H]
            y_sem = slab[..., H:2 * H]        # audio index for both variants
            y_str = slab[..., 4 * H:5 * H]    # (faithful to reference for l>=1)
            x_pack = jnp.concatenate([x_sem, x_str], axis=-1)
            y_pack = jnp.concatenate([y_sem, y_sem, y_str, y_str], axis=-1)

        wsem = jnp.concatenate([params["spk"][l], params["mspk_w"][l]],
                               axis=1).astype(jnp.bfloat16)
        wstr = jnp.concatenate([params["dis"][l], params["mdis_w"][l]],
                               axis=1).astype(jnp.bfloat16)
        w2blk = block_diag([params["mspk_w2"][l], params["mspk_w2"][l],
                            params["mdis_w2"][l], params["mdis_w2"][l]],
                           jnp.bfloat16)

        # One fused kernel per layer: 4 GATs + modality adds + 6 cross-attns.
        slab = gat_xattn_layer(x_pack, y_pack, sem_bias, str_bias,
                               wsem, wstr, w2blk, aff_blk, hidden=H)
        # dropout == identity in eval mode

    # Final MLP with H_cat concat fused in (no (B,N,288) HBM materialization).
    num_class = params["mlp_w"][-1].shape[1]
    logits2d = mlp_forward(slab.reshape(B * N, 6 * H),
                           raw.reshape(B * N, -1),
                           params["mlp_w"], params["mlp_b"])
    logits = logits2d.reshape(B, N, num_class)

    beta = 0.3
    return (logits,
            beta * (diff_loss / args.gnn_layers),
            nce_loss,
            beta * (moe_lb_loss / args.gnn_layers))


# ----------------------------------------------------------------------------
# Main
# ----------------------------------------------------------------------------
if __name__ == "__main__":
    args = SimpleNamespace(
        emb_dim=32, audio_emb_dim=32, visual_emb_dim=32,
        hidden_dim=32, gnn_layers=2, mlp_layers=2, dropout=0.1,
        use_nce_loss=False, use_diff_loss=False, use_moe_lb_loss=False,
        nce_single_or_cross=1,
    )
    num_class = 4
    B, N = 2, 8

    key = jax.random.PRNGKey(0)
    k_p, k_u, k_a, k_v, k_s, k_t = jax.random.split(key, 6)
    params = init_params(k_p, args, num_class)

    utterance_features = jax.random.normal(k_u, (B, N, args.emb_dim), jnp.float32)
    audio_features = jax.random.normal(k_a, (B, N, args.audio_emb_dim), jnp.float32)
    visual_features = jax.random.normal(k_v, (B, N, args.visual_emb_dim), jnp.float32)
    semantic_adj = jax.random.randint(k_s, (B, N, N), 0, 6, jnp.int32)
    structure_adj = jax.random.randint(k_t, (B, N, N), 0, 18, jnp.int32)

    fwd = jax.jit(functools.partial(mmgats_forward, args=args))
    logits, dloss, nloss, mloss = fwd(params, utterance_features, audio_features,
                                      visual_features, semantic_adj, structure_adj)
    jax.block_until_ready(logits)
    jax.block_until_ready(dloss)

    assert logits.shape == (B, N, num_class)
    assert bool(jnp.all(jnp.isfinite(logits)))
    print("KERNEL_OK")
</pallas_src>

<mosaic_0001>
module attributes {stable_mosaic.version = 11 : i64} {
  func.func @_proj_kernel(%arg0: memref<16x96xf32, #tpu.memory_space<vmem>>, %arg1: memref<96x96xbf16, #tpu.memory_space<vmem>>, %arg2: memref<1x96xf32, #tpu.memory_space<vmem>>, %arg3: memref<16x96xf32, #tpu.memory_space<vmem>>) attributes {dimension_semantics = [], scalar_prefetch = 0 : i64, scratch_operands = 0 : i64, tpu.core_type = #tpu.core_type<tc>} {
    %c0 = arith.constant 0 : index
    %c0_0 = arith.constant 0 : index
    %0 = vector.load %arg0[%c0, %c0_0] : memref<16x96xf32, #tpu.memory_space<vmem>>, vector<16x96xf32>
    %c0_1 = arith.constant 0 : index
    %c0_2 = arith.constant 0 : index
    %1 = vector.load %arg1[%c0_1, %c0_2] : memref<96x96xbf16, #tpu.memory_space<vmem>>, vector<96x96xbf16>
    %2 = arith.truncf %0 : vector<16x96xf32> to vector<16x96xbf16>
    %cst = arith.constant dense<0.000000e+00> : vector<16x96xf32>
    %3 = tpu.matmul %2, %1, %cst {dimension_numbers = #tpu.dot_dimension_numbers<[1], [0], [0], [1], [0, 0, 1, 1], [], []>} : vector<16x96xbf16>, vector<96x96xbf16>, vector<16x96xf32> -> vector<16x96xf32>
    %c0_3 = arith.constant 0 : index
    %c0_4 = arith.constant 0 : index
    %4 = vector.load %arg2[%c0_3, %c0_4] : memref<1x96xf32, #tpu.memory_space<vmem>>, vector<1x96xf32>
    %5 = vector.broadcast %4 : vector<1x96xf32> to vector<16x96xf32>
    %6 = arith.addf %3, %5 : vector<16x96xf32>
    %cst_5 = arith.constant 0.000000e+00 : f32
    %7 = vector.broadcast %cst_5 : f32 to vector<16x96xf32>
    %8 = arith.maximumf %6, %7 : vector<16x96xf32>
    %c0_6 = arith.constant 0 : index
    %c0_7 = arith.constant 0 : index
    %9 = vector.load %arg3[%c0_6, %c0_7] : memref<16x96xf32, #tpu.memory_space<vmem>>, vector<16x96xf32>
    tpu.vector_store %arg3[%c0_6, %c0_7], %8 {strides = array<i32>} : memref<16x96xf32, #tpu.memory_space<vmem>>, vector<16x96xf32>,
    return
  }
}

module attributes {stable_mosaic.version = 11 : i64} {
  func.func @_layer_kernel(%arg0: i32, %arg1: memref<1x8x64xf32, #tpu.memory_space<vmem>>, %arg2: memref<1x8x128xf32, #tpu.memory_space<vmem>>, %arg3: memref<1x8x8xf32, #tpu.memory_space<vmem>>, %arg4: memref<1x8x8xf32, #tpu.memory_space<vmem>>, %arg5: memref<32x64xbf16, #tpu.memory_space<vmem>>, %arg6: memref<32x64xbf16, #tpu.memory_space<vmem>>, %arg7: memref<128x128xbf16, #tpu.memory_space<vmem>>, %arg8: memref<192x192xbf16, #tpu.memory_space<vmem>>, %arg9: memref<1x8x192xf32, #tpu.memory_space<vmem>>) attributes {dimension_semantics = [#tpu.dimension_semantics<parallel>], iteration_bounds = array<i64: 2>, scalar_prefetch = 0 : i64, scratch_operands = 0 : i64, tpu.core_type = #tpu.core_type<tc>, window_params = [{transform_indices = @transform_0, window_bounds = array<i64: 1, 8, 64>}, {transform_indices = @transform_1, window_bounds = array<i64: 1, 8, 128>}, {transform_indices = @transform_2, window_bounds = array<i64: 1, 8, 8>}, {transform_indices = @transform_3, window_bounds = array<i64: 1, 8, 8>}, {pipeline_mode = #tpu.pipeline_mode<synchronous>, transform_indices = @transform_4, window_bounds = array<i64: 32, 64>}, {pipeline_mode = #tpu.pipeline_mode<synchronous>, transform_indices = @transform_5, window_bounds = array<i64: 32, 64>}, {pipeline_mode = #tpu.pipeline_mode<synchronous>, transform_indices = @transform_6, window_bounds = array<i64: 128, 128>}, {pipeline_mode = #tpu.pipeline_mode<synchronous>, transform_indices = @transform_7, window_bounds = array<i64: 192, 192>}, {transform_indices = @transform_8, window_bounds = array<i64: 1, 8, 192>}]} {
    %c0 = arith.constant 0 : index
    %c0_0 = arith.constant 0 : index
    %c0_1 = arith.constant 0 : index
    %0 = vector.load %arg1[%c0, %c0_0, %c0_1] : memref<1x8x64xf32, #tpu.memory_space<vmem>>, vector<1x8x64xf32>
    %1 = vector.shape_cast %0 : vector<1x8x64xf32> to vector<8x64xf32>
    %c0_2 = arith.constant 0 : index
    %c0_3 = arith.constant 0 : index
    %c0_4 = arith.constant 0 : index
    %2 = vector.load %arg2[%c0_2, %c0_3, %c0_4] : memref<1x8x128xf32, #tpu.memory_space<vmem>>, vector<1x8x128xf32>
    %3 = vector.shape_cast %2 : vector<1x8x128xf32> to vector<8x128xf32>
    %c0_5 = arith.constant 0 : index
    %c0_6 = arith.constant 0 : index
    %c0_7 = arith.constant 0 : index
    %4 = vector.load %arg3[%c0_5, %c0_6, %c0_7] : memref<1x8x8xf32, #tpu.memory_space<vmem>>, vector<1x8x8xf32>
    %5 = vector.shape_cast %4 : vector<1x8x8xf32> to vector<8x8xf32>
    %c0_8 = arith.constant 0 : index
    %c0_9 = arith.constant 0 : index
    %c0_10 = arith.constant 0 : index
    %6 = vector.load %arg4[%c0_8, %c0_9, %c0_10] : memref<1x8x8xf32, #tpu.memory_space<vmem>>, vector<1x8x8xf32>
    %7 = vector.shape_cast %6 : vector<1x8x8xf32> to vector<8x8xf32>
    %8 = vector.extract_strided_slice %1 {offsets = [0, 0], sizes = [8, 32], strides = [1, 1]} : vector<8x64xf32> to vector<8x32xf32>
    %9 = vector.extract_strided_slice %1 {offsets = [0, 32], sizes = [8, 32], strides = [1, 1]} : vector<8x64xf32> to vector<8x32xf32>
    %c0_11 = arith.constant 0 : index
    %c0_12 = arith.constant 0 : index
    %10 = vector.load %arg5[%c0_11, %c0_12] : memref<32x64xbf16, #tpu.memory_space<vmem>>, vector<32x64xbf16>
    %11 = arith.truncf %8 : vector<8x32xf32> to vector<8x32xbf16>
    %cst = arith.constant dense<0.000000e+00> : vector<8x64xf32>
    %12 = tpu.matmul %11, %10, %cst {dimension_numbers = #tpu.dot_dimension_numbers<[1], [0], [0], [1], [0, 0, 1, 1], [], []>} : vector<8x32xbf16>, vector<32x64xbf16>, vector<8x64xf32> -> vector<8x64xf32>
    %c0_13 = arith.constant 0 : index
    %c0_14 = arith.constant 0 : index
    %13 = vector.load %arg6[%c0_13, %c0_14] : memref<32x64xbf16, #tpu.memory_space<vmem>>, vector<32x64xbf16>
    %14 = arith.truncf %9 : vector<8x32xf32> to vector<8x32xbf16>
    %cst_15 = arith.constant dense<0.000000e+00> : vector<8x64xf32>
    %15 = tpu.matmul %14, %13, %cst_15 {dimension_numbers = #tpu.dot_dimension_numbers<[1], [0], [0], [1], [0, 0, 1, 1], [], []>} : vector<8x32xbf16>, vector<32x64xbf16>, vector<8x64xf32> -> vector<8x64xf32>
    %16 = vector.extract_strided_slice %12 {offsets = [0, 0], sizes = [8, 32], strides = [1, 1]} : vector<8x64xf32> to vector<8x32xf32>
    %17 = vector.extract_strided_slice %12 {offsets = [0, 32], sizes = [8, 32], strides = [1, 1]} : vector<8x64xf32> to vector<8x32xf32>
    %18 = vector.extract_strided_slice %15 {offsets = [0, 0], sizes = [8, 32], strides = [1, 1]} : vector<8x64xf32> to vector<8x32xf32>
    %19 = vector.extract_strided_slice %15 {offsets = [0, 32], sizes = [8, 32], strides = [1, 1]} : vector<8x64xf32> to vector<8x32xf32>
    %20 = arith.truncf %16 : vector<8x32xf32> to vector<8x32xbf16>
    %21 = arith.truncf %16 : vector<8x32xf32> to vector<8x32xbf16>
    %cst_16 = arith.constant dense<0.000000e+00> : vector<8x8xf32>
    %22 = tpu.matmul %20, %21, %cst_16 {dimension_numbers = #tpu.dot_dimension_numbers<[1], [1], [0], [0], [0, 0, 1, 0], [], []>} : vector<8x32xbf16>, vector<8x32xbf16>, vector<8x8xf32> -> vector<8x8xf32>
    %cst_17 = arith.constant 0.000000e+00 : f32
    %23 = vector.broadcast %cst_17 : f32 to vector<8x8xf32>
    %24 = arith.cmpf ogt, %22, %23 : vector<8x8xf32>
    %cst_18 = arith.constant 2.000000e-01 : f32
    %25 = vector.broadcast %cst_18 : f32 to vector<8x8xf32>
    %26 = arith.mulf %25, %22 : vector<8x8xf32>
    %27 = arith.select %24, %22, %26 : vector<8x8xi1>, vector<8x8xf32>
    %28 = arith.addf %27, %5 : vector<8x8xf32>
    %cst_19 = arith.constant dense<0xFF800000> : vector<8xf32>
    %29 = vector.multi_reduction <maximumf>, %28, %cst_19 [1] : vector<8x8xf32> to vector<8xf32>
    %30 = vector.shape_cast %29 : vector<8xf32> to vector<8x1xf32>
    %31 = vector.broadcast %30 : vector<8x1xf32> to vector<8x8xf32>
    %32 = arith.subf %28, %31 : vector<8x8xf32>
    %33 = math.exp %32 : vector<8x8xf32>
    %cst_20 = arith.constant dense<0.000000e+00> : vector<8xf32>
    %34 = vector.multi_reduction <add>, %33, %cst_20 [1] : vector<8x8xf32> to vector<8xf32>
    %35 = vector.shape_cast %34 : vector<8xf32> to vector<8x1xf32>
    %36 = tpu.reciprocal %35 {approx = true} : vector<8x1xf32> -> vector<8x1xf32>
    %37 = vector.broadcast %36 : vector<8x1xf32> to vector<8x8xf32>
    %38 = arith.mulf %33, %37 : vector<8x8xf32>
    %39 = arith.truncf %38 : vector<8x8xf32> to vector<8x8xbf16>
    %40 = arith.truncf %16 : vector<8x32xf32> to vector<8x32xbf16>
    %cst_21 = arith.constant dense<0.000000e+00> : vector<8x32xf32>
    %41 = tpu.matmul %39, %40, %cst_21 {dimension_numbers = #tpu.dot_dimension_numbers<[1], [0], [0], [1], [0, 0, 1, 1], [], []>} : vector<8x8xbf16>, vector<8x32xbf16>, vector<8x32xf32> -> vector<8x32xf32>
    %42 = arith.truncf %18 : vector<8x32xf32> to vector<8x32xbf16>
    %43 = arith.truncf %18 : vector<8x32xf32> to vector<8x32xbf16>
    %cst_22 = arith.constant dense<0.000000e+00> : vector<8x8xf32>
    %44 = tpu.matmul %42, %43, %cst_22 {dimension_numbers = #tpu.dot_dimension_numbers<[1], [1], [0], [0], [0, 0, 1, 0], [], []>} : vector<8x32xbf16>, vector<8x32xbf16>, vector<8x8xf32> -> vector<8x8xf32>
    %cst_23 = arith.constant 0.000000e+00 : f32
    %45 = vector.broadcast %cst_23 : f32 to vector<8x8xf32>
    %46 = arith.cmpf ogt, %44, %45 : vector<8x8xf32>
    %cst_24 = arith.constant 2.000000e-01 : f32
    %47 = vector.broadcast %cst_24 : f32 to vector<8x8xf32>
    %48 = arith.mulf %47, %44 : vector<8x8xf32>
    %49 = arith.select %46, %44, %48 : vector<8x8xi1>, vector<8x8xf32>
    %50 = arith.addf %49, %7 : vector<8x8xf32>
    %cst_25 = arith.constant dense<0xFF800000> : vector<8xf32>
    %51 = vector.multi_reduction <maximumf>, %50, %cst_25 [1] : vector<8x8xf32> to vector<8xf32>
    %52 = vector.shape_cast %51 : vector<8xf32> to vector<8x1xf32>
    %53 = vector.broadcast %52 : vector<8x1xf32> to vector<8x8xf32>
    %54 = arith.subf %50, %53 : vector<8x8xf32>
    %55 = math.exp %54 : vector<8x8xf32>
    %cst_26 = arith.constant dense<0.000000e+00> : vector<8xf32>
    %56 = vector.multi_reduction <add>, %55, %cst_26 [1] : vector<8x8xf32> to vector<8xf32>
    %57 = vector.shape_cast %56 : vector<8xf32> to vector<8x1xf32>
    %58 = tpu.reciprocal %57 {approx = true} : vector<8x1xf32> -> vector<8x1xf32>
    %59 = vector.broadcast %58 : vector<8x1xf32> to vector<8x8xf32>
    %60 = arith.mulf %55, %59 : vector<8x8xf32>
    %61 = arith.truncf %60 : vector<8x8xf32> to vector<8x8xbf16>
    %62 = arith.truncf %18 : vector<8x32xf32> to vector<8x32xbf16>
    %cst_27 = arith.constant dense<0.000000e+00> : vector<8x32xf32>
    %63 = tpu.matmul %61, %62, %cst_27 {dimension_numbers = #tpu.dot_dimension_numbers<[1], [0], [0], [1], [0, 0, 1, 1], [], []>} : vector<8x8xbf16>, vector<8x32xbf16>, vector<8x32xf32> -> vector<8x32xf32>
    %64 = arith.truncf %17 : vector<8x32xf32> to vector<8x32xbf16>
    %65 = arith.truncf %17 : vector<8x32xf32> to vector<8x32xbf16>
    %cst_28 = arith.constant dense<0.000000e+00> : vector<8x8xf32>
    %66 = tpu.matmul %64, %65, %cst_28 {dimension_numbers = #tpu.dot_dimension_numbers<[1], [1], [0], [0], [0, 0, 1, 0], [], []>} : vector<8x32xbf16>, vector<8x32xbf16>, vector<8x8xf32> -> vector<8x8xf32>
    %cst_29 = arith.constant 0.000000e+00 : f32
    %67 = vector.broadcast %cst_29 : f32 to vector<8x8xf32>
    %68 = arith.cmpf ogt, %66, %67 : vector<8x8xf32>
    %cst_30 = arith.constant 2.000000e-01 : f32
    %69 = vector.broadcast %cst_30 : f32 to vector<8x8xf32>
    %70 = arith.mulf %69, %66 : vector<8x8xf32>
    %71 = arith.select %68, %66, %70 : vector<8x8xi1>, vector<8x8xf32>
    %72 = arith.addf %71, %5 : vector<8x8xf32>
    %cst_31 = arith.constant dense<0xFF800000> : vector<8xf32>
    %73 = vector.multi_reduction <maximumf>, %72, %cst_31 [1] : vector<8x8xf32> to vector<8xf32>
    %74 = vector.shape_cast %73 : vector<8xf32> to vector<8x1xf32>
    %75 = vector.broadcast %74 : vector<8x1xf32> to vector<8x8xf32>
    %76 = arith.subf %72, %75 : vector<8x8xf32>
    %77 = math.exp %76 : vector<8x8xf32>
    %cst_32 = arith.constant dense<0.000000e+00> : vector<8xf32>
    %78 = vector.multi_reduction <add>, %77, %cst_32 [1] : vector<8x8xf32> to vector<8xf32>
    %79 = vector.shape_cast %78 : vector<8xf32> to vector<8x1xf32>
    %80 = tpu.reciprocal %79 {approx = true} : vector<8x1xf32> -> vector<8x1xf32>
    %81 = vector.broadcast %80 : vector<8x1xf32> to vector<8x8xf32>
    %82 = arith.mulf %77, %81 : vector<8x8xf32>
    %83 = arith.truncf %82 : vector<8x8xf32> to vector<8x8xbf16>
    %84 = arith.truncf %17 : vector<8x32xf32> to vector<8x32xbf16>
    %cst_33 = arith.constant dense<0.000000e+00> : vector<8x32xf32>
    %85 = tpu.matmul %83, %84, %cst_33 {dimension_numbers = #tpu.dot_dimension_numbers<[1], [0], [0], [1], [0, 0, 1, 1], [], []>} : vector<8x8xbf16>, vector<8x32xbf16>, vector<8x32xf32> -> vector<8x32xf32>
    %86 = arith.truncf %19 : vector<8x32xf32> to vector<8x32xbf16>
    %87 = arith.truncf %19 : vector<8x32xf32> to vector<8x32xbf16>
    %cst_34 = arith.constant dense<0.000000e+00> : vector<8x8xf32>
    %88 = tpu.matmul %86, %87, %cst_34 {dimension_numbers = #tpu.dot_dimension_numbers<[1], [1], [0], [0], [0, 0, 1, 0], [], []>} : vector<8x32xbf16>, vector<8x32xbf16>, vector<8x8xf32> -> vector<8x8xf32>
    %cst_35 = arith.constant 0.000000e+00 : f32
    %89 = vector.broadcast %cst_35 : f32 to vector<8x8xf32>
    %90 = arith.cmpf ogt, %88, %89 : vector<8x8xf32>
    %cst_36 = arith.constant 2.000000e-01 : f32
    %91 = vector.broadcast %cst_36 : f32 to vector<8x8xf32>
    %92 = arith.mulf %91, %88 : vector<8x8xf32>
    %93 = arith.select %90, %88, %92 : vector<8x8xi1>, vector<8x8xf32>
    %94 = arith.addf %93, %7 : vector<8x8xf32>
    %cst_37 = arith.constant dense<0xFF800000> : vector<8xf32>
    %95 = vector.multi_reduction <maximumf>, %94, %cst_37 [1] : vector<8x8xf32> to vector<8xf32>
    %96 = vector.shape_cast %95 : vector<8xf32> to vector<8x1xf32>
    %97 = vector.broadcast %96 : vector<8x1xf32> to vector<8x8xf32>
    %98 = arith.subf %94, %97 : vector<8x8xf32>
    %99 = math.exp %98 : vector<8x8xf32>
    %cst_38 = arith.constant dense<0.000000e+00> : vector<8xf32>
    %100 = vector.multi_reduction <add>, %99, %cst_38 [1] : vector<8x8xf32> to vector<8xf32>
    %101 = vector.shape_cast %100 : vector<8xf32> to vector<8x1xf32>
    %102 = tpu.reciprocal %101 {approx = true} : vector<8x1xf32> -> vector<8x1xf32>
    %103 = vector.broadcast %102 : vector<8x1xf32> to vector<8x8xf32>
    %104 = arith.mulf %99, %103 : vector<8x8xf32>
    %105 = arith.truncf %104 : vector<8x8xf32> to vector<8x8xbf16>
    %106 = arith.truncf %19 : vector<8x32xf32> to vector<8x32xbf16>
    %cst_39 = arith.constant dense<0.000000e+00> : vector<8x32xf32>
    %107 = tpu.matmul %105, %106, %cst_39 {dimension_numbers = #tpu.dot_dimension_numbers<[1], [0], [0], [1], [0, 0, 1, 1], [], []>} : vector<8x8xbf16>, vector<8x32xbf16>, vector<8x32xf32> -> vector<8x32xf32>
    %c0_40 = arith.constant 0 : index
    %c0_41 = arith.constant 0 : index
    %108 = vector.load %arg7[%c0_40, %c0_41] : memref<128x128xbf16, #tpu.memory_space<vmem>>, vector<128x128xbf16>
    %109 = arith.truncf %3 : vector<8x128xf32> to vector<8x128xbf16>
    %cst_42 = arith.constant dense<0.000000e+00> : vector<8x128xf32>
    %110 = tpu.matmul %109, %108, %cst_42 {dimension_numbers = #tpu.dot_dimension_numbers<[1], [0], [0], [1], [0, 0, 1, 1], [], []>} : vector<8x128xbf16>, vector<128x128xbf16>, vector<8x128xf32> -> vector<8x128xf32>
    %cst_43 = arith.constant 0.000000e+00 : f32
    %111 = vector.broadcast %cst_43 : f32 to vector<8x32xf32>
    %112 = arith.maximumf %41, %111 : vector<8x32xf32>
    %cst_44 = arith.constant 0.000000e+00 : f32
    %113 = vector.broadcast %cst_44 : f32 to vector<8x32xf32>
    %114 = arith.maximumf %63, %113 : vector<8x32xf32>
    %115 = vector.extract_strided_slice %110 {offsets = [0, 0], sizes = [8, 32], strides = [1, 1]} : vector<8x128xf32> to vector<8x32xf32>
    %116 = arith.addf %85, %115 : vector<8x32xf32>
    %cst_45 = arith.constant 0.000000e+00 : f32
    %117 = vector.broadcast %cst_45 : f32 to vector<8x32xf32>
    %118 = arith.maximumf %116, %117 : vector<8x32xf32>
    %119 = vector.extract_strided_slice %110 {offsets = [0, 32], sizes = [8, 32], strides = [1, 1]} : vector<8x128xf32> to vector<8x32xf32>
    %120 = arith.addf %85, %119 : vector<8x32xf32>
    %cst_46 = arith.constant 0.000000e+00 : f32
    %121 = vector.broadcast %cst_46 : f32 to vector<8x32xf32>
    %122 = arith.maximumf %120, %121 : vector<8x32xf32>
    %123 = vector.extract_strided_slice %110 {offsets = [0, 64], sizes = [8, 32], strides = [1, 1]} : vector<8x128xf32> to vector<8x32xf32>
    %124 = arith.addf %107, %123 : vector<8x32xf32>
    %cst_47 = arith.constant 0.000000e+00 : f32
    %125 = vector.broadcast %cst_47 : f32 to vector<8x32xf32>
    %126 = arith.maximumf %124, %125 : vector<8x32xf32>
    %127 = vector.extract_strided_slice %110 {offsets = [0, 96], sizes = [8, 32], strides = [1, 1]} : vector<8x128xf32> to vector<8x32xf32>
    %128 = arith.addf %107, %127 : vector<8x32xf32>
    %cst_48 = arith.constant 0.000000e+00 : f32
    %129 = vector.broadcast %cst_48 : f32 to vector<8x32xf32>
    %130 = arith.maximumf %128, %129 : vector<8x32xf32>
    %131 = tpu.concatenate %112, %114, %118, %126, %122, %130 in 1 : vector<8x32xf32>, vector<8x32xf32>, vector<8x32xf32>, vector<8x32xf32>, vector<8x32xf32>, vector<8x32xf32> -> vector<8x192xf32>
    %c0_49 = arith.constant 0 : index
    %c0_50 = arith.constant 0 : index
    %132 = vector.load %arg8[%c0_49, %c0_50] : memref<192x192xbf16, #tpu.memory_space<vmem>>, vector<192x192xbf16>
    %133 = arith.truncf %131 : vector<8x192xf32> to vector<8x192xbf16>
    %cst_51 = arith.constant dense<0.000000e+00> : vector<8x192xf32>
    %134 = tpu.matmul %133, %132, %cst_51 {dimension_numbers = #tpu.dot_dimension_numbers<[1], [0], [0], [1], [0, 0, 1, 1], [], []>} : vector<8x192xbf16>, vector<192x192xbf16>, vector<8x192xf32> -> vector<8x192xf32>
    %135 = vector.extract_strided_slice %134 {offsets = [0, 0], sizes = [8, 32], strides = [1, 1]} : vector<8x192xf32> to vector<8x32xf32>
    %136 = arith.truncf %135 : vector<8x32xf32> to vector<8x32xbf16>
    %137 = arith.truncf %114 : vector<8x32xf32> to vector<8x32xbf16>
    %cst_52 = arith.constant dense<0.000000e+00> : vector<8x8xf32>
    %138 = tpu.matmul %136, %137, %cst_52 {dimension_numbers = #tpu.dot_dimension_numbers<[1], [1], [0], [0], [0, 0, 1, 0], [], []>} : vector<8x32xbf16>, vector<8x32xbf16>, vector<8x8xf32> -> vector<8x8xf32>
    %cst_53 = arith.constant dense<0xFF800000> : vector<8xf32>
    %139 = vector.multi_reduction <maximumf>, %138, %cst_53 [1] : vector<8x8xf32> to vector<8xf32>
    %140 = vector.shape_cast %139 : vector<8xf32> to vector<8x1xf32>
    %141 = vector.broadcast %140 : vector<8x1xf32> to vector<8x8xf32>
    %142 = arith.subf %138, %141 : vector<8x8xf32>
    %143 = math.exp %142 : vector<8x8xf32>
    %cst_54 = arith.constant dense<0.000000e+00> : vector<8xf32>
    %144 = vector.multi_reduction <add>, %143, %cst_54 [1] : vector<8x8xf32> to vector<8xf32>
    %145 = vector.shape_cast %144 : vector<8xf32> to vector<8x1xf32>
    %146 = tpu.reciprocal %145 {approx = true} : vector<8x1xf32> -> vector<8x1xf32>
    %147 = vector.broadcast %146 : vector<8x1xf32> to vector<8x8xf32>
    %148 = arith.mulf %143, %147 : vector<8x8xf32>
    %149 = arith.truncf %148 : vector<8x8xf32> to vector<8x8xbf16>
    %150 = arith.truncf %114 : vector<8x32xf32> to vector<8x32xbf16>
    %cst_55 = arith.constant dense<0.000000e+00> : vector<8x32xf32>
    %151 = tpu.matmul %149, %150, %cst_55 {dimension_numbers = #tpu.dot_dimension_numbers<[1], [0], [0], [1], [0, 0, 1, 1], [], []>} : vector<8x8xbf16>, vector<8x32xbf16>, vector<8x32xf32> -> vector<8x32xf32>
    %152 = vector.extract_strided_slice %134 {offsets = [0, 32], sizes = [8, 32], strides = [1, 1]} : vector<8x192xf32> to vector<8x32xf32>
    %153 = arith.truncf %152 : vector<8x32xf32> to vector<8x32xbf16>
    %154 = arith.truncf %112 : vector<8x32xf32> to vector<8x32xbf16>
    %cst_56 = arith.constant dense<0.000000e+00> : vector<8x8xf32>
    %155 = tpu.matmul %153, %154, %cst_56 {dimension_numbers = #tpu.dot_dimension_numbers<[1], [1], [0], [0], [0, 0, 1, 0], [], []>} : vector<8x32xbf16>, vector<8x32xbf16>, vector<8x8xf32> -> vector<8x8xf32>
    %cst_57 = arith.constant dense<0xFF800000> : vector<8xf32>
    %156 = vector.multi_reduction <maximumf>, %155, %cst_57 [1] : vector<8x8xf32> to vector<8xf32>
    %157 = vector.shape_cast %156 : vector<8xf32> to vector<8x1xf32>
    %158 = vector.broadcast %157 : vector<8x1xf32> to vector<8x8xf32>
    %159 = arith.subf %155, %158 : vector<8x8xf32>
    %160 = math.exp %159 : vector<8x8xf32>
    %cst_58 = arith.constant dense<0.000000e+00> : vector<8xf32>
    %161 = vector.multi_reduction <add>, %160, %cst_58 [1] : vector<8x8xf32> to vector<8xf32>
    %162 = vector.shape_cast %161 : vector<8xf32> to vector<8x1xf32>
    %163 = tpu.reciprocal %162 {approx = true} : vector<8x1xf32> -> vector<8x1xf32>
    %164 = vector.broadcast %163 : vector<8x1xf32> to vector<8x8xf32>
    %165 = arith.mulf %160, %164 : vector<8x8xf32>
    %166 = arith.truncf %165 : vector<8x8xf32> to vector<8x8xbf16>
    %167 = arith.truncf %112 : vector<8x32xf32> to vector<8x32xbf16>
    %cst_59 = arith.constant dense<0.000000e+00> : vector<8x32xf32>
    %168 = tpu.matmul %166, %167, %cst_59 {dimension_numbers = #tpu.dot_dimension_numbers<[1], [0], [0], [1], [0, 0, 1, 1], [], []>} : vector<8x8xbf16>, vector<8x32xbf16>, vector<8x32xf32> -> vector<8x32xf32>
    %169 = vector.extract_strided_slice %134 {offsets = [0, 64], sizes = [8, 32], strides = [1, 1]} : vector<8x192xf32> to vector<8x32xf32>
    %170 = arith.truncf %169 : vector<8x32xf32> to vector<8x32xbf16>
    %171 = arith.truncf %126 : vector<8x32xf32> to vector<8x32xbf16>
    %cst_60 = arith.constant dense<0.000000e+00> : vector<8x8xf32>
    %172 = tpu.matmul %170, %171, %cst_60 {dimension_numbers = #tpu.dot_dimension_numbers<[1], [1], [0], [0], [0, 0, 1, 0], [], []>} : vector<8x32xbf16>, vector<8x32xbf16>, vector<8x8xf32> -> vector<8x8xf32>
    %cst_61 = arith.constant dense<0xFF800000> : vector<8xf32>
    %173 = vector.multi_reduction <maximumf>, %172, %cst_61 [1] : vector<8x8xf32> to vector<8xf32>
    %174 = vector.shape_cast %173 : vector<8xf32> to vector<8x1xf32>
    %175 = vector.broadcast %174 : vector<8x1xf32> to vector<8x8xf32>
    %176 = arith.subf %172, %175 : vector<8x8xf32>
    %177 = math.exp %176 : vector<8x8xf32>
    %cst_62 = arith.constant dense<0.000000e+00> : vector<8xf32>
    %178 = vector.multi_reduction <add>, %177, %cst_62 [1] : vector<8x8xf32> to vector<8xf32>
    %179 = vector.shape_cast %178 : vector<8xf32> to vector<8x1xf32>
    %180 = tpu.reciprocal %179 {approx = true} : vector<8x1xf32> -> vector<8x1xf32>
    %181 = vector.broadcast %180 : vector<8x1xf32> to vector<8x8xf32>
    %182 = arith.mulf %177, %181 : vector<8x8xf32>
    %183 = arith.truncf %182 : vector<8x8xf32> to vector<8x8xbf16>
    %184 = arith.truncf %126 : vector<8x32xf32> to vector<8x32xbf16>
    %cst_63 = arith.constant dense<0.000000e+00> : vector<8x32xf32>
    %185 = tpu.matmul %183, %184, %cst_63 {dimension_numbers = #tpu.dot_dimension_numbers<[1], [0], [0], [1], [0, 0, 1, 1], [], []>} : vector<8x8xbf16>, vector<8x32xbf16>, vector<8x32xf32> -> vector<8x32xf32>
    %186 = vector.extract_strided_slice %134 {offsets = [0, 96], sizes = [8, 32], strides = [1, 1]} : vector<8x192xf32> to vector<8x32xf32>
    %187 = arith.truncf %186 : vector<8x32xf32> to vector<8x32xbf16>
    %188 = arith.truncf %118 : vector<8x32xf32> to vector<8x32xbf16>
    %cst_64 = arith.constant dense<0.000000e+00> : vector<8x8xf32>
    %189 = tpu.matmul %187, %188, %cst_64 {dimension_numbers = #tpu.dot_dimension_numbers<[1], [1], [0], [0], [0, 0, 1, 0], [], []>} : vector<8x32xbf16>, vector<8x32xbf16>, vector<8x8xf32> -> vector<8x8xf32>
    %cst_65 = arith.constant dense<0xFF800000> : vector<8xf32>
    %190 = vector.multi_reduction <maximumf>, %189, %cst_65 [1] : vector<8x8xf32> to vector<8xf32>
    %191 = vector.shape_cast %190 : vector<8xf32> to vector<8x1xf32>
    %192 = vector.broadcast %191 : vector<8x1xf32> to vector<8x8xf32>
    %193 = arith.subf %189, %192 : vector<8x8xf32>
    %194 = math.exp %193 : vector<8x8xf32>
    %cst_66 = arith.constant dense<0.000000e+00> : vector<8xf32>
    %195 = vector.multi_reduction <add>, %194, %cst_66 [1] : vector<8x8xf32> to vector<8xf32>
    %196 = vector.shape_cast %195 : vector<8xf32> to vector<8x1xf32>
    %197 = tpu.reciprocal %196 {approx = true} : vector<8x1xf32> -> vector<8x1xf32>
    %198 = vector.broadcast %197 : vector<8x1xf32> to vector<8x8xf32>
    %199 = arith.mulf %194, %198 : vector<8x8xf32>
    %200 = arith.truncf %199 : vector<8x8xf32> to vector<8x8xbf16>
    %201 = arith.truncf %118 : vector<8x32xf32> to vector<8x32xbf16>
    %cst_67 = arith.constant dense<0.000000e+00> : vector<8x32xf32>
    %202 = tpu.matmul %200, %201, %cst_67 {dimension_numbers = #tpu.dot_dimension_numbers<[1], [0], [0], [1], [0, 0, 1, 1], [], []>} : vector<8x8xbf16>, vector<8x32xbf16>, vector<8x32xf32> -> vector<8x32xf32>
    %203 = vector.extract_strided_slice %134 {offsets = [0, 128], sizes = [8, 32], strides = [1, 1]} : vector<8x192xf32> to vector<8x32xf32>
    %204 = arith.truncf %203 : vector<8x32xf32> to vector<8x32xbf16>
    %205 = arith.truncf %130 : vector<8x32xf32> to vector<8x32xbf16>
    %cst_68 = arith.constant dense<0.000000e+00> : vector<8x8xf32>
    %206 = tpu.matmul %204, %205, %cst_68 {dimension_numbers = #tpu.dot_dimension_numbers<[1], [1], [0], [0], [0, 0, 1, 0], [], []>} : vector<8x32xbf16>, vector<8x32xbf16>, vector<8x8xf32> -> vector<8x8xf32>
    %cst_69 = arith.constant dense<0xFF800000> : vector<8xf32>
    %207 = vector.multi_reduction <maximumf>, %206, %cst_69 [1] : vector<8x8xf32> to vector<8xf32>
    %208 = vector.shape_cast %207 : vector<8xf32> to vector<8x1xf32>
    %209 = vector.broadcast %208 : vector<8x1xf32> to vector<8x8xf32>
    %210 = arith.subf %206, %209 : vector<8x8xf32>
    %211 = math.exp %210 : vector<8x8xf32>
    %cst_70 = arith.constant dense<0.000000e+00> : vector<8xf32>
    %212 = vector.multi_reduction <add>, %211, %cst_70 [1] : vector<8x8xf32> to vector<8xf32>
    %213 = vector.shape_cast %212 : vector<8xf32> to vector<8x1xf32>
    %214 = tpu.reciprocal %213 {approx = true} : vector<8x1xf32> -> vector<8x1xf32>
    %215 = vector.broadcast %214 : vector<8x1xf32> to vector<8x8xf32>
    %216 = arith.mulf %211, %215 : vector<8x8xf32>
    %217 = arith.truncf %216 : vector<8x8xf32> to vector<8x8xbf16>
    %218 = arith.truncf %130 : vector<8x32xf32> to vector<8x32xbf16>
    %cst_71 = arith.constant dense<0.000000e+00> : vector<8x32xf32>
    %219 = tpu.matmul %217, %218, %cst_71 {dimension_numbers = #tpu.dot_dimension_numbers<[1], [0], [0], [1], [0, 0, 1, 1], [], []>} : vector<8x8xbf16>, vector<8x32xbf16>, vector<8x32xf32> -> vector<8x32xf32>
    %220 = vector.extract_strided_slice %134 {offsets = [0, 160], sizes = [8, 32], strides = [1, 1]} : vector<8x192xf32> to vector<8x32xf32>
    %221 = arith.truncf %220 : vector<8x32xf32> to vector<8x32xbf16>
    %222 = arith.truncf %122 : vector<8x32xf32> to vector<8x32xbf16>
    %cst_72 = arith.constant dense<0.000000e+00> : vector<8x8xf32>
    %223 = tpu.matmul %221, %222, %cst_72 {dimension_numbers = #tpu.dot_dimension_numbers<[1], [1], [0], [0], [0, 0, 1, 0], [], []>} : vector<8x32xbf16>, vector<8x32xbf16>, vector<8x8xf32> -> vector<8x8xf32>
    %cst_73 = arith.constant dense<0xFF800000> : vector<8xf32>
    %224 = vector.multi_reduction <maximumf>, %223, %cst_73 [1] : vector<8x8xf32> to vector<8xf32>
    %225 = vector.shape_cast %224 : vector<8xf32> to vector<8x1xf32>
    %226 = vector.broadcast %225 : vector<8x1xf32> to vector<8x8xf32>
    %227 = arith.subf %223, %226 : vector<8x8xf32>
    %228 = math.exp %227 : vector<8x8xf32>
    %cst_74 = arith.constant dense<0.000000e+00> : vector<8xf32>
    %229 = vector.multi_reduction <add>, %228, %cst_74 [1] : vector<8x8xf32> to vector<8xf32>
    %230 = vector.shape_cast %229 : vector<8xf32> to vector<8x1xf32>
    %231 = tpu.reciprocal %230 {approx = true} : vector<8x1xf32> -> vector<8x1xf32>
    %232 = vector.broadcast %231 : vector<8x1xf32> to vector<8x8xf32>
    %233 = arith.mulf %228, %232 : vector<8x8xf32>
    %234 = arith.truncf %233 : vector<8x8xf32> to vector<8x8xbf16>
    %235 = arith.truncf %122 : vector<8x32xf32> to vector<8x32xbf16>
    %cst_75 = arith.constant dense<0.000000e+00> : vector<8x32xf32>
    %236 = tpu.matmul %234, %235, %cst_75 {dimension_numbers = #tpu.dot_dimension_numbers<[1], [0], [0], [1], [0, 0, 1, 1], [], []>} : vector<8x8xbf16>, vector<8x32xbf16>, vector<8x32xf32> -> vector<8x32xf32>
    %237 = tpu.concatenate %151, %185, %219, %168, %202, %236 in 1 : vector<8x32xf32>, vector<8x32xf32>, vector<8x32xf32>, vector<8x32xf32>, vector<8x32xf32>, vector<8x32xf32> -> vector<8x192xf32>
    %c0_76 = arith.constant 0 : index
    %c0_77 = arith.constant 0 : index
    %c0_78 = arith.constant 0 : index
    %238 = vector.load %arg9[%c0_76, %c0_77, %c0_78] : memref<1x8x192xf32, #tpu.memory_space<vmem>>, vector<1x8x192xf32>
    %239 = vector.shape_cast %238 : vector<1x8x192xf32> to vector<8x192xf32>
    %240 = vector.shape_cast %237 : vector<8x192xf32> to vector<1x8x192xf32>
    tpu.vector_store %arg9[%c0_76, %c0_77, %c0_78], %240 {strides = array<i32>} : memref<1x8x192xf32, #tpu.memory_space<vmem>>, vector<1x8x192xf32>,
    return
  }
  func.func @transform_0(%arg0: i32) -> (i32, i32, i32) {
    %c0_i32 = arith.constant 0 : i32
    %c0_i32_0 = arith.constant 0 : i32
    %c0_i32_1 = arith.constant 0 : i32
    return %arg0, %c0_i32, %c0_i32_0 : i32, i32, i32
  }
  func.func @transform_1(%arg0: i32) -> (i32, i32, i32) {
    %c0_i32 = arith.constant 0 : i32
    %c0_i32_0 = arith.constant 0 : i32
    %c0_i32_1 = arith.constant 0 : i32
    return %arg0, %c0_i32, %c0_i32_0 : i32, i32, i32
  }
  func.func @transform_2(%arg0: i32) -> (i32, i32, i32) {
    %c0_i32 = arith.constant 0 : i32
    %c0_i32_0 = arith.constant 0 : i32
    %c0_i32_1 = arith.constant 0 : i32
    return %arg0, %c0_i32, %c0_i32_0 : i32, i32, i32
  }
  func.func @transform_3(%arg0: i32) -> (i32, i32, i32) {
    %c0_i32 = arith.constant 0 : i32
    %c0_i32_0 = arith.constant 0 : i32
    %c0_i32_1 = arith.constant 0 : i32
    return %arg0, %c0_i32, %c0_i32_0 : i32, i32, i32
  }
  func.func @transform_4(%arg0: i32) -> (i32, i32) {
    %c0_i32 = arith.constant 0 : i32
    %c0_i32_0 = arith.constant 0 : i32
    %c0_i32_1 = arith.constant 0 : i32
    return %c0_i32, %c0_i32_0 : i32, i32
  }
  func.func @transform_5(%arg0: i32) -> (i32, i32) {
    %c0_i32 = arith.constant 0 : i32
    %c0_i32_0 = arith.constant 0 : i32
    %c0_i32_1 = arith.constant 0 : i32
    return %c0_i32, %c0_i32_0 : i32, i32
  }
  func.func @transform_6(%arg0: i32) -> (i32, i32) {
    %c0_i32 = arith.constant 0 : i32
    %c0_i32_0 = arith.constant 0 : i32
    %c0_i32_1 = arith.constant 0 : i32
    return %c0_i32, %c0_i32_0 : i32, i32
  }
  func.func @transform_7(%arg0: i32) -> (i32, i32) {
    %c0_i32 = arith.constant 0 : i32
    %c0_i32_0 = arith.constant 0 : i32
    %c0_i32_1 = arith.constant 0 : i32
    return %c0_i32, %c0_i32_0 : i32, i32
  }
  func.func @transform_8(%arg0: i32) -> (i32, i32, i32) {
    %c0_i32 = arith.constant 0 : i32
    %c0_i32_0 = arith.constant 0 : i32
    %c0_i32_1 = arith.constant 0 : i32
    return %arg0, %c0_i32, %c0_i32_0 : i32, i32, i32
  }
}

module attributes {stable_mosaic.version = 11 : i64} {
  func.func @_mlp_kernel(%arg0: memref<16x192xf32, #tpu.memory_space<vmem>>, %arg1: memref<16x96xf32, #tpu.memory_space<vmem>>, %arg2: memref<192x32xbf16, #tpu.memory_space<vmem>>, %arg3: memref<96x32xbf16, #tpu.memory_space<vmem>>, %arg4: memref<1x32xf32, #tpu.memory_space<vmem>>, %arg5: memref<32x32xbf16, #tpu.memory_space<vmem>>, %arg6: memref<1x32xf32, #tpu.memory_space<vmem>>, %arg7: memref<32x128xbf16, #tpu.memory_space<vmem>>, %arg8: memref<1x128xf32, #tpu.memory_space<vmem>>, %arg9: memref<16x128xf32, #tpu.memory_space<vmem>>) attributes {dimension_semantics = [], scalar_prefetch = 0 : i64, scratch_operands = 0 : i64, tpu.core_type = #tpu.core_type<tc>} {
    %c0 = arith.constant 0 : index
    %c0_0 = arith.constant 0 : index
    %0 = vector.load %arg0[%c0, %c0_0] : memref<16x192xf32, #tpu.memory_space<vmem>>, vector<16x192xf32>
    %c0_1 = arith.constant 0 : index
    %c0_2 = arith.constant 0 : index
    %1 = vector.load %arg2[%c0_1, %c0_2] : memref<192x32xbf16, #tpu.memory_space<vmem>>, vector<192x32xbf16>
    %2 = arith.truncf %0 : vector<16x192xf32> to vector<16x192xbf16>
    %cst = arith.constant dense<0.000000e+00> : vector<16x32xf32>
    %3 = tpu.matmul %2, %1, %cst {dimension_numbers = #tpu.dot_dimension_numbers<[1], [0], [0], [1], [0, 0, 1, 1], [], []>} : vector<16x192xbf16>, vector<192x32xbf16>, vector<16x32xf32> -> vector<16x32xf32>
    %c0_3 = arith.constant 0 : index
    %c0_4 = arith.constant 0 : index
    %4 = vector.load %arg1[%c0_3, %c0_4] : memref<16x96xf32, #tpu.memory_space<vmem>>, vector<16x96xf32>
    %c0_5 = arith.constant 0 : index
    %c0_6 = arith.constant 0 : index
    %5 = vector.load %arg3[%c0_5, %c0_6] : memref<96x32xbf16, #tpu.memory_space<vmem>>, vector<96x32xbf16>
    %6 = arith.truncf %4 : vector<16x96xf32> to vector<16x96xbf16>
    %cst_7 = arith.constant dense<0.000000e+00> : vector<16x32xf32>
    %7 = tpu.matmul %6, %5, %cst_7 {dimension_numbers = #tpu.dot_dimension_numbers<[1], [0], [0], [1], [0, 0, 1, 1], [], []>} : vector<16x96xbf16>, vector<96x32xbf16>, vector<16x32xf32> -> vector<16x32xf32>
    %8 = arith.addf %3, %7 : vector<16x32xf32>
    %c0_8 = arith.constant 0 : index
    %c0_9 = arith.constant 0 : index
    %9 = vector.load %arg4[%c0_8, %c0_9] : memref<1x32xf32, #tpu.memory_space<vmem>>, vector<1x32xf32>
    %10 = vector.broadcast %9 : vector<1x32xf32> to vector<16x32xf32>
    %11 = arith.addf %8, %10 : vector<16x32xf32>
    %cst_10 = arith.constant 0.000000e+00 : f32
    %12 = vector.broadcast %cst_10 : f32 to vector<16x32xf32>
    %13 = arith.maximumf %11, %12 : vector<16x32xf32>
    %c0_11 = arith.constant 0 : index
    %c0_12 = arith.constant 0 : index
    %14 = vector.load %arg5[%c0_11, %c0_12] : memref<32x32xbf16, #tpu.memory_space<vmem>>, vector<32x32xbf16>
    %15 = arith.truncf %13 : vector<16x32xf32> to vector<16x32xbf16>
    %cst_13 = arith.constant dense<0.000000e+00> : vector<16x32xf32>
    %16 = tpu.matmul %15, %14, %cst_13 {dimension_numbers = #tpu.dot_dimension_numbers<[1], [0], [0], [1], [0, 0, 1, 1], [], []>} : vector<16x32xbf16>, vector<32x32xbf16>, vector<16x32xf32> -> vector<16x32xf32>
    %c0_14 = arith.constant 0 : index
    %c0_15 = arith.constant 0 : index
    %17 = vector.load %arg6[%c0_14, %c0_15] : memref<1x32xf32, #tpu.memory_space<vmem>>, vector<1x32xf32>
    %18 = vector.broadcast %17 : vector<1x32xf32> to vector<16x32xf32>
    %19 = arith.addf %16, %18 : vector<16x32xf32>
    %cst_16 = arith.constant 0.000000e+00 : f32
    %20 = vector.broadcast %cst_16 : f32 to vector<16x32xf32>
    %21 = arith.maximumf %19, %20 : vector<16x32xf32>
    %c0_17 = arith.constant 0 : index
    %c0_18 = arith.constant 0 : index
    %22 = vector.load %arg7[%c0_17, %c0_18] : memref<32x128xbf16, #tpu.memory_space<vmem>>, vector<32x128xbf16>
    %23 = arith.truncf %21 : vector<16x32xf32> to vector<16x32xbf16>
    %cst_19 = arith.constant dense<0.000000e+00> : vector<16x128xf32>
    %24 = tpu.matmul %23, %22, %cst_19 {dimension_numbers = #tpu.dot_dimension_numbers<[1], [0], [0], [1], [0, 0, 1, 1], [], []>} : vector<16x32xbf16>, vector<32x128xbf16>, vector<16x128xf32> -> vector<16x128xf32>
    %c0_20 = arith.constant 0 : index
    %c0_21 = arith.constant 0 : index
    %25 = vector.load %arg8[%c0_20, %c0_21] : memref<1x128xf32, #tpu.memory_space<vmem>>, vector<1x128xf32>
    %26 = vector.broadcast %25 : vector<1x128xf32> to vector<16x128xf32>
    %27 = arith.addf %24, %26 : vector<16x128xf32>
    %c0_22 = arith.constant 0 : index
    %c0_23 = arith.constant 0 : index
    %28 = vector.load %arg9[%c0_22, %c0_23] : memref<16x128xf32, #tpu.memory_space<vmem>>, vector<16x128xf32>
    tpu.vector_store %arg9[%c0_22, %c0_23], %27 {strides = array<i32>} : memref<16x128xf32, #tpu.memory_space<vmem>>, vector<16x128xf32>,
    return
  }
}

</mosaic_0001>

<bundles_post_ra>
// kernel: mmgats_forward.4
= control target key start
LH: loop header
LB: loop body
LE: loop exit
PB: predicated region body
PF: predicated region fallthrough
CT: control target
= control target key end

     0   :  { %v165_v0 = vmov 0.0   ;;  %vm166_vm0 = vmmov 0   ;;  %vm73_vm1 = vcmask 785408   ;;  %s220_s1 = inlined_call_operand.vmem [shape: bf16[96,96], index: 1, kind: input, shape index: {}]   ;;  %s221_s0 = inlined_call_operand.vmem [shape: f32[16,96], index: 0, kind: input, shape index: {}]   ;;  %s222_s2 = inlined_call_operand.vmem [shape: f32[1,96], index: 2, kind: input, shape index: {}]   ;;  %s223_s3 = inlined_call_operand.vmem [shape: f32[16,96], index: 3, kind: output, shape index: {}]  }
   0x1   :  { %141 = vmatprep.subr.bf16.mxu0 %v165_v0  ;;  %v159_v1 = vld [vmem:[%s220_s1 + $0x28] sm:$0xff]   ;;  %153 = vmatprep.mubr.msk.bf16.mxu0 %vm166_vm0, %v165_v0  ;;  %v160_v2 = vld [vmem:[%s220_s1 + $0x20] sm:$0xff]   ;;  %v161_v3 = vld [vmem:[%s220_s1 + $0x18] sm:$0xff]  }
   0x2   :  { %142 = vmatpush3.bf16.msra.mxu0 %v159_v1  ;;  %v162_v4 = vld [vmem:[%s220_s1 + $0x10] sm:$0xff]   ;;  %v163_v5 = vld [vmem:[%s220_s1 + $0x8] sm:$0xff]   ;;  %v164_v6 = vld [vmem:[%s220_s1] sm:$0xff]  }
   0x3   :  { %143 = vmatprep.subr.bf16.mxu0 %v165_v0  ;;  %v15_v7 = vld [vmem:[%s221_s0] sm:$0xff]  ;;  %v16_v8 = vld [vmem:[%s221_s0 + $0x8] sm:$0xff] }
   0x4   :  { %v29_v9 = vpack.c.bf16 %v16_v8, %v15_v7  ;;  %v126_v10 = vld [vmem:[%s222_s2] ss:$0 sm:$0xff] }
   0x6   :  { %144 = vmatpush3.bf16.msra.mxu0 %v160_v2 }
   0x7   :  { %145 = vmatprep.subr.bf16.mxu0 %v165_v0 }
   0xa   :  { %146 = vmatpush3.bf16.msra.mxu0 %v161_v3 }
   0xb   :  { %147 = vmatprep.subr.bf16.mxu0 %v165_v0 }
   0xe   :  { %148 = vmatpush3.bf16.msra.mxu0 %v162_v4 }
   0xf   :  { %149 = vmatprep.subr.bf16.mxu0 %v165_v0 }
  0x12   :  { %150 = vmatpush3.bf16.msra.mxu0 %v163_v5 }
  0x13   :  { %151 = vmatprep.subr.bf16.mxu0 %v165_v0 }
  0x16   :  { %152 = vmatpush3.bf16.msra.mxu0 %v164_v6 }
  0x19   :  { %154 = vmatmul.mubr.msk.bf16.vlgmr.msra.gmra.mxu0 %vm73_vm1, %v29_v9 }
  0xd9   :  { %v111_v11 = vpop.f32.mrf.mxu0 }
  0xda   :  { %v112_v12 = vadd.f32 %v126_v10, %v111_v11 }
  0xdb   :  { %v155_v13 = vpop.f32.mrf.mxu0 }
  0xdc   :  { %v118_v14 = vmax.f32 %v112_v12, 0.0 }
  0xdd   :  { %v114_v15 = vpop.f32.mrf.mxu0 }
  0xde   :  { %120 = vst.msk [vmem:[%s223_s3] sm:$0xff] %vm73_vm1, %v118_v14  ;;  %v115_v16 = vadd.f32 %v126_v10, %v114_v15 }
  0xdf   :  { %v156_v17 = vpop.f32.mrf.mxu0 }
  0xe0   :  { %v119_v18 = vmax.f32 %v115_v16, 0.0 }
  0xe2   :  { %121 = vst.msk [vmem:[%s223_s3 + $0x8] sm:$0xff] %vm73_vm1, %v119_v18 }

// kernel: mmgats_forward.7
= control target key start
LH: loop header
LB: loop body
LE: loop exit
PB: predicated region body
PF: predicated region fallthrough
CT: control target
= control target key end

     0   :  { %v531_v0 = vmov 0   ;;  %v532_v2 = vmov 0.0   ;;  %vm533_vm0 = vmmov 0   ;;  %vm231_vm1 = vcmask 523264   ;;  %s713_s2 = inlined_call_operand.vmem [shape: bf16[192,32], index: 2, kind: input, shape index: {}]   ;;  %s714_s3 = inlined_call_operand.vmem [shape: bf16[96,32], index: 3, kind: input, shape index: {}]   ;;  %s715_s0 = inlined_call_operand.vmem [shape: f32[16,192], index: 0, kind: input, shape index: {}]   ;;  %s716_s1 = inlined_call_operand.vmem [shape: f32[16,96], index: 1, kind: input, shape index: {}]   ;;  %s717_s5 = inlined_call_operand.vmem [shape: bf16[32,32], index: 5, kind: input, shape index: {}]   ;;  %s718_s4 = inlined_call_operand.vmem [shape: f32[1,32], index: 4, kind: input, shape index: {}]   ;;  %s719_s7 = inlined_call_operand.vmem [shape: bf16[32,128], index: 7, kind: input, shape index: {}]   ;;  %s720_s6 = inlined_call_operand.vmem [shape: f32[1,32], index: 6, kind: input, shape index: {}]   ;;  %s721_s8 = inlined_call_operand.vmem [shape: f32[1,128], index: 8, kind: input, shape index: {}]   ;;  %s722_s9 = inlined_call_operand.vmem [shape: f32[16,128], index: 9, kind: output, shape index: {}]  }
   0x1   :  { %235 = vmatprep.subr.bf16.mxu1 %v531_v0  ;;  %v509_v1 = vld [vmem:[%s713_s2 + $0x38] sm:$0xff]   ;;  %474 = vmatprep.subr.bf16.mxu0 %v532_v2  ;;  %v510_v3 = vld [vmem:[%s713_s2 + $0x30] sm:$0xff]   ;;  %v514_v4 = vld [vmem:[%s714_s3 + $0x28] sm:$0xff]   ;;  %vm114_vm2 = vcmask 785408   ;;  %vm311_vm3 = vcmask 261120  }
   0x2   :  { %486 = vmatprep.mubr.msk.bf16.mxu0 %vm533_vm0, %v532_v2  ;;  %236 = vmatpush1.bf16.msra.mxu1 %v509_v1  ;;  %v511_v5 = vld [vmem:[%s713_s2 + $0x28] sm:$0xff]   ;;  %v516_v6 = vld [vmem:[%s714_s3 + $0x20] sm:$0xff]   ;;  %v518_v8 = vld [vmem:[%s714_s3 + $0x18] sm:$0xff]  }
   0x3   :  { %237 = vmatprep.subr.bf16.mxu1 %v531_v0  ;;  %475 = vmatpush3.bf16.msra.mxu0 %v514_v4  ;;  %v512_v7 = vld [vmem:[%s713_s2 + $0x20] sm:$0xff]   ;;  %v513_v9 = vld [vmem:[%s713_s2 + $0x18] sm:$0xff]   ;;  %v520_v10 = vld [vmem:[%s714_s3 + $0x10] sm:$0xff]  }
   0x4   :  { %476 = vmatprep.subr.bf16.mxu0 %v532_v2  ;;  %v515_v11 = vld [vmem:[%s713_s2 + $0x10] sm:$0xff]   ;;  %v34_v12 = vld [vmem:[%s715_s0 + $0x8] sm:$0xff]  ;;  %v36_v14 = vld [vmem:[%s715_s0 + $0x18] sm:$0xff] }
   0x5   :  { %v522_v13 = vld [vmem:[%s714_s3 + $0x8] sm:$0xff]   ;;  %v62_v15 = vpack.c.bf16 %v36_v14, %v34_v12  ;;  %v524_v17 = vld [vmem:[%s714_s3] sm:$0xff]   ;;  %v521_v22 = vld [vmem:[%s713_s2 + $0x58] sm:$0xff]  }
   0x6   :  { %238 = vmatpush1.bf16.msra.mxu1 %v510_v3  ;;  %v517_v16 = vld [vmem:[%s713_s2 + $0x8] sm:$0xff]   ;;  %v63_v18 = vld [vmem:[%s716_s1] sm:$0xff]  ;;  %v523_v23 = vld [vmem:[%s713_s2 + $0x50] sm:$0xff]  }
   0x7   :  { %239 = vmatprep.subr.bf16.mxu1 %v531_v0  ;;  %477 = vmatpush3.bf16.msra.mxu0 %v516_v6  ;;  %v64_v19 = vld [vmem:[%s716_s1 + $0x8] sm:$0xff]  ;;  %v519_v20 = vld [vmem:[%s713_s2] sm:$0xff]   ;;  %v35_v27 = vld [vmem:[%s715_s0 + $0x10] sm:$0xff] }
   0x8   :  { %478 = vmatprep.subr.bf16.mxu0 %v532_v2  ;;  %451 = vmatprep.mubr.msk.bf16.mxu1 %vm231_vm1, %v62_v15  ;;  %v77_v21 = vpack.c.bf16 %v64_v19, %v63_v18  ;;  %v525_v24 = vld [vmem:[%s713_s2 + $0x48] sm:$0xff]   ;;  %v526_v25 = vld [vmem:[%s713_s2 + $0x40] sm:$0xff]  }
   0x9   :  { %v33_v26 = vld [vmem:[%s715_s0] sm:$0xff]  ;;  %v527_v29 = vld [vmem:[%s717_s5 + $0x8] sm:$0xff]  }
   0xa   :  { %240 = vmatpush1.bf16.msra.mxu1 %v511_v5  ;;  %v61_v28 = vpack.c.bf16 %v35_v27, %v33_v26  ;;  %v528_v30 = vld [vmem:[%s717_s5] sm:$0xff]   ;;  %v529_v47 = vld [vmem:[%s719_s7 + $0x8] sm:$0xff]  }
   0xb   :  { %241 = vmatprep.subr.bf16.mxu1 %v531_v0  ;;  %479 = vmatpush3.bf16.msra.mxu0 %v518_v8  ;;  %v452_v37 = vld [vmem:[%s718_s4] ss:$0 sm:$0xff] }
   0xc   :  { %480 = vmatprep.subr.bf16.mxu0 %v532_v2  ;;  %v530_v48 = vld [vmem:[%s719_s7] sm:$0xff]  }
   0xd   :  { %v453_v49 = vld [vmem:[%s720_s6] ss:$0 sm:$0xff] }
   0xe   :  { %242 = vmatpush1.bf16.msra.mxu1 %v512_v7  ;;  %v457_v59 = vld [vmem:[%s721_s8] ss:$0 sm:$0xff] }
   0xf   :  { %243 = vmatprep.subr.bf16.mxu1 %v531_v0  ;;  %481 = vmatpush3.bf16.msra.mxu0 %v520_v10 }
  0x10   :  { %482 = vmatprep.subr.bf16.mxu0 %v532_v2 }
  0x12   :  { %244 = vmatpush1.bf16.msra.mxu1 %v513_v9 }
  0x13   :  { %245 = vmatprep.subr.bf16.mxu1 %v531_v0  ;;  %483 = vmatpush3.bf16.msra.mxu0 %v522_v13 }
  0x14   :  { %484 = vmatprep.subr.bf16.mxu0 %v532_v2 }
  0x16   :  { %246 = vmatpush1.bf16.msra.mxu1 %v515_v11 }
  0x17   :  { %247 = vmatprep.subr.bf16.mxu1 %v531_v0  ;;  %485 = vmatpush3.bf16.msra.mxu0 %v524_v17 }
  0x18   :  { %490 = vmatprep.subr.bf16.mxu0 %v532_v2 }
  0x1a   :  { %248 = vmatpush1.bf16.msra.mxu1 %v517_v16  ;;  %487 = vmatmul.mubr.msk.bf16.vlgmr.msra.gmra.mxu0 %vm114_vm2, %v77_v21 }
  0x1b   :  { %249 = vmatprep.subr.bf16.mxu1 %v531_v0  ;;  %494 = vmatprep.mubr.msk.bf16.mxu0 %vm533_vm0, %v532_v2 }
  0x1c   :  { %491 = vmatpush3.bf16.msra.mxu0 %v527_v29 }
  0x1d   :  { %492 = vmatprep.subr.bf16.mxu0 %v532_v2 }
  0x1e   :  { %250 = vmatpush1.bf16.msra.mxu1 %v519_v20 }
  0x1f   :  { %259 = vmatprep.subr.bf16.mxu1 %v531_v0 }
  0x20   :  { %493 = vmatpush3.bf16.msra.mxu0 %v528_v30 }
  0x21   :  { %498 = vmatprep.subr.bf16.mxu0 %v532_v2 }
  0x22   :  { %260 = vmatpush2.bf16.msra.mxu1 %v521_v22 }
  0x23   :  { %261 = vmatprep.subr.bf16.mxu1 %v531_v0 }
  0x26   :  { %262 = vmatpush2.bf16.msra.mxu1 %v523_v23 }
  0x27   :  { %263 = vmatprep.subr.bf16.mxu1 %v531_v0 }
  0x2a   :  { %264 = vmatpush2.bf16.msra.mxu1 %v525_v24 }
  0x2b   :  { %265 = vmatprep.subr.bf16.mxu1 %v531_v0 }
  0x2e   :  { %266 = vmatpush2.bf16.msra.mxu1 %v526_v25 }
  0x31   :  { %268 = vmatmul.mubr.bf16.vlgmr.msra.gmra.mxu1 %v61_v28 }
  0xda   :  { %v152_v31 = vpop.f32.mrf.mxu0 }
  0xdc   :  { %v488_v32 = vpop.f32.mrf.mxu0 }
  0xde   :  { %v155_v33 = vpop.f32.mrf.mxu0 }
  0xe0   :  { %v489_v34 = vpop.f32.mrf.mxu0 }
  0xf1   :  { %v269_v35 = vpop.f32.mrf.mxu1 }
  0xf2   :  { %v270_v36 = vadd.f32 %v269_v35, %v152_v31 }
  0xf3   :  { %v271_v38 = vpop.f32.mrf.mxu1 }
  0xf4   :  { %v283_v40 = vadd.f32 %v452_v37, %v270_v36 }
  0xf5   :  { %v272_v39 = vpop.f32.mrf.mxu1 }
  0xf6   :  { %v273_v41 = vadd.f32 %v272_v39, %v155_v33  ;;  %v285_v44 = vmax.f32 %v283_v40, 0.0 }
  0xf7   :  { %v274_v42 = vpop.f32.mrf.mxu1 }
  0xf8   :  { %v284_v43 = vadd.f32 %v452_v37, %v273_v41 }
  0xfa   :  { %v286_v45 = vmax.f32 %v284_v43, 0.0 }
  0xfc   :  { %v291_v46 = vpack.c.bf16 %v286_v45, %v285_v44 }
  0xfe   :  { %495 = vmatmul.mubr.msk.bf16.vlgmr.msra.gmra.mxu0 %vm311_vm3, %v291_v46 }
  0xff   :  { %502 = vmatprep.mubr.msk.bf16.mxu0 %vm533_vm0, %v532_v2  ;;  %499 = vmatpush3.bf16.msra.mxu0 %v529_v47 }
 0x100   :  { %500 = vmatprep.subr.bf16.mxu0 %v532_v2 }
 0x103   :  { %501 = vmatpush3.bf16.msra.mxu0 %v530_v48 }
 0x1be   :  { %v349_v50 = vpop.f32.mrf.mxu0 }
 0x1bf   :  { %v350_v52 = vadd.f32 %v453_v49, %v349_v50 }
 0x1c0   :  { %v496_v51 = vpop.f32.mrf.mxu0 }
 0x1c1   :  { %v356_v56 = vmax.f32 %v350_v52, 0.0 }
 0x1c2   :  { %v352_v53 = vpop.f32.mrf.mxu0 }
 0x1c3   :  { %v353_v54 = vadd.f32 %v453_v49, %v352_v53 }
 0x1c4   :  { %v497_v55 = vpop.f32.mrf.mxu0 }
 0x1c5   :  { %v357_v57 = vmax.f32 %v353_v54, 0.0 }
 0x1c7   :  { %v362_v58 = vpack.c.bf16 %v357_v57, %v356_v56 }
 0x1c9   :  { %503 = vmatmul.mubr.msk.bf16.vlgmr.msra.gmra.mxu0 %vm311_vm3, %v362_v58 }
 0x289   :  { %v419_v60 = vpop.f32.mrf.mxu0 }
 0x28a   :  { %v420_v61 = vadd.f32 %v457_v59, %v419_v60 }
 0x28b   :  { %v504_v62 = vpop.f32.mrf.mxu0 }
 0x28c   :  { %426 = vst [vmem:[%s722_s9] sm:$0xff] %v420_v61 }
 0x28d   :  { %v422_v63 = vpop.f32.mrf.mxu0 }
 0x28e   :  { %v423_v0 = vadd.f32 %v457_v59, %v422_v63 }
 0x28f   :  { %v505_v1 = vpop.f32.mrf.mxu0 }
 0x290   :  { %427 = vst [vmem:[%s722_s9 + $0x8] sm:$0xff] %v423_v0 }

// kernel: mmgats_forward.5
= control target key start
LH: loop header
LB: loop body
LE: loop exit
PB: predicated region body
PF: predicated region fallthrough
CT: control target
= control target key end

     0   :  { %s2442_s27 = smov 0   ;;  %s2826_s0 = inlined_call_operand.vmem [shape: f32[2,8,64], index: 0, kind: input, shape index: {}]   ;;  %s2827_s1 = inlined_call_operand.vmem [shape: f32[2,8,128], index: 1, kind: input, shape index: {}]   ;;  %s2828_s2 = inlined_call_operand.vmem [shape: f32[2,8,8], index: 2, kind: input, shape index: {}]   ;;  %s2829_s3 = inlined_call_operand.vmem [shape: f32[2,8,8], index: 3, kind: input, shape index: {}]   ;;  %s2830_s4 = inlined_call_operand.vmem [shape: bf16[32,64], index: 4, kind: input, shape index: {}]   ;;  %s2831_s5 = inlined_call_operand.vmem [shape: bf16[32,64], index: 5, kind: input, shape index: {}]   ;;  %s2832_s6 = inlined_call_operand.vmem [shape: bf16[128,128], index: 6, kind: input, shape index: {}]   ;;  %s2833_s7 = inlined_call_operand.vmem [shape: bf16[192,192], index: 7, kind: input, shape index: {}]   ;;  %s2834_s8 = inlined_call_operand.vmem [shape: f32[2,8,192], index: 8, kind: output, shape index: {}]  }
   0x1 LB: > { %s1994_s28 = sadd.s32 4294967295, %s2390_s27   ;;  %p1998_p0 = scmp.ge.s32.totalorder %s2390_s27, 1  ;;  %s2390_s27 = sphi %s2442_s27, %s18_s27  }
   0x2   : > { %p288_p1 = scmp.lt.s32.totalorder %s2390_s27, 3 }
   0x4   : > { %p289_p2 = pnand %p1998_p0, %p288_p1 }
   0x5   : > { %p333_p3 = scmp.lt.s32.totalorder (!%p289_p2), %s1994_s28, 1  ;;  %s2394_s19 = smov (!%p289_p2), 96  }
   0x6   : > { %292 = sbr.rel (%p289_p2) target bundleno = 2842 (0xb1a), region = 52  ;;  %s2396_s29 = smov (!%p289_p2), 32  }
   0xb   : > { %v2296_v0 = vld [vmem:[%s2830_s4 + $0x8] sm:$0xff]   ;;  %v2392_v1 = vmov 0.0   ;;  %v2297_v2 = vld [vmem:[%s2830_s4] sm:$0xff]   ;;  %vm2393_vm0 = vmmov 0   ;;  %s2836_s28 = smov (!%p333_p3, %s1994_s28), 1  ;;  %vm376_vm1 = vcmask 261120  }
   0xc   : > { %2122 = vmatprep.subr.bf16.mxu0 %v2392_v1  ;;  %2130 = vmatprep.subr.bf16.mxu1 %v2392_v1  ;;  %v2298_v3 = vld [vmem:[%s2831_s5 + $0x8] sm:$0xff]   ;;  %v2299_v4 = vld [vmem:[%s2831_s5] sm:$0xff]   ;;  %s2473_s15 = sshll.u32 %s2836_s28, 3  ;;  %vm546_vm2 = vcmask 1043456   ;;  %vm530_vm4 = vcmask 64512   ;;  %v2300_v54 = vld [vmem:[%s2832_s6 + $0x38] sm:$0xff]  }
   0xd   : > { %2123 = vmatpush3.bf16.msra.mxu0 %v2296_v0  ;;  %2126 = vmatprep.mubr.msk.bf16.mxu0 %vm2393_vm0, %v2392_v1  ;;  %s336_s18 = scalar_lea.vmem %s2826_s0, %s2473_s15  ;;  %s344_s22 = scalar_lea.vmem %s2828_s2, %s2473_s15  ;;  %v2301_v55 = vld [vmem:[%s2832_s6 + $0x30] sm:$0xff]   ;;  %v2302_v58 = vld [vmem:[%s2832_s6 + $0x28] sm:$0xff]   ;;  %v2303_v59 = vld [vmem:[%s2832_s6 + $0x20] sm:$0xff]   ;;  %vm1050_vm8 = vcmask 523264   ;;  %vm1052_vm9 = vcmask 785408  }
   0xe   : > { %2124 = vmatprep.subr.bf16.mxu0 %v2392_v1  ;;  %2134 = vmatprep.mubr.msk.bf16.mxu1 %vm2393_vm0, %v2392_v1  ;;  %v355_v5 = vld [vmem:[%s336_s18] sm:$0xff]  ;;  %s348_s25 = scalar_lea.vmem %s2829_s3, %s2473_s15  ;;  %v2304_v60 = vld [vmem:[%s2832_s6 + $0x18] sm:$0xff]   ;;  %v2305_v61 = vld [vmem:[%s2832_s6 + $0x10] sm:$0xff]   ;;  %s340_s26 = scalar_lea.vmem %s2827_s1, %s2473_s15 }
   0xf   : > { %2131 = vmatpush3.bf16.msra.mxu1 %v2298_v3  ;;  %v363_v6 = vpack.c.bf16 %v355_v5, %v355_v5  ;;  %v357_v25 = vld [vmem:[%s344_s22] sm:$0xff]  ;;  %v2306_v62 = vld [vmem:[%s2832_s6 + $0x8] sm:$0xff]   ;;  %s2395_s15 = smov 64   ;;  %s2066_s24 = sshll.u32 %s2836_s28, 4 }
  0x10   : > { %2132 = vmatprep.subr.bf16.mxu1 %v2392_v1  ;;  %v358_v36 = vld [vmem:[%s348_s25] sm:$0xff] }
  0x11   : > { %2125 = vmatpush3.bf16.msra.mxu0 %v2297_v2  ;;  %425 = vrot.lane.b32.xlu0 %v363_v6, %s2394_s19  ;;  %v2307_v63 = vld [vmem:[%s2832_s6] sm:$0xff]  }
  0x12   : > { %2138 = vmatprep.subr.bf16.mxu0 %v2392_v1  ;;  %v356_v0 = vld [vmem:[%s340_s26] sm:$0xff] }
  0x13   : > { %2133 = vmatpush3.bf16.msra.mxu1 %v2299_v4  ;;  %v924_v2 = vpack.c.bf16 %v356_v0, %v356_v0 }
  0x14   : > { %2144 = vmatprep.subr.bf16.mxu1 %v2392_v1  ;;  %2127 = vmatmul.mubr.msk.bf16.vlgmr.msra.gmra.mxu0 %vm376_vm1, %v363_v6 }
  0x15   : > { %2140 = vmatprep.mubr.msk.bf16.mxu0 %vm2393_vm0, %v2392_v1 }
  0x83   : > { %v426_v7 = vpop.permute.xlu0 %425 }
  0x84   : > { %2135 = vmatmul.mubr.msk.bf16.vlgmr.msra.gmra.mxu1 %vm376_vm1, %v426_v7 }
  0x85   : > { %2146 = vmatprep.mubr.msk.bf16.mxu1 %vm2393_vm0, %v2392_v1 }
  0xd4   : > { %v414_v8 = vpop.f32.mrf.mxu0 }
  0xd5   : > { %v482_v9 = vpack.c.bf16 %v414_v8, %v414_v8 }
  0xd6   : > { %v2128_v10 = vpop.f32.mrf.mxu0 }
  0xd7   : > { %v484_v11 = vsel %vm376_vm1, %v482_v9, 0  ;;  %695 = vrot.lane.b32.xlu0 %v482_v9, %s2394_s19  ;;  %v547_v12 = vsel %vm546_vm2, %v482_v9, 0 }
  0xd8   : > { %2139 = vmatpush3.bf16.xpose.msra.mxu0 %v484_v11  ;;  %v417_v13 = vpop.f32.mrf.mxu0  ;;  %2145 = vmatpush3.bf16.msra.mxu1 %v547_v12 }
  0xd9   : > { %2150 = vmatprep.subr.bf16.mxu0 %v2392_v1  ;;  %2156 = vmatprep.subr.bf16.mxu1 %v2392_v1 }
  0xda   : > { %v2129_v14 = vpop.f32.mrf.mxu0 }
  0xdf   : > { %2141 = vmatmul.mubr.msk.bf16.vlgmr.msra.gmra.mxu0 %vm376_vm1, %v482_v9 }
  0xe0   : > { %2152 = vmatprep.mubr.msk.bf16.mxu0 %vm2393_vm0, %v2392_v1 }
 0x144   : > { %v476_v15 = vpop.f32.mrf.mxu1 }
 0x145   : > { %v2496_v16 = vpack.c.bf16 %v476_v15, %v476_v15 }
 0x146   : > { %v2136_v17 = vpop.f32.mrf.mxu1 }
 0x147   : > { %802 = vrot.lane.b32.xlu1 %v2496_v16, %s2394_s19  ;;  %v591_v18 = vsel %vm376_vm1, %v2496_v16, 0 }
 0x148   : > { %v479_v19 = vpop.f32.mrf.mxu1  ;;  %2151 = vmatpush3.bf16.xpose.msra.mxu0 %v591_v18 }
 0x149   : > { %2162 = vmatprep.subr.bf16.mxu0 %v2392_v1  ;;  %v2503_v21 = vpop.permute.xlu0 %695 }
 0x14a   : > { %v2137_v20 = vpop.f32.mrf.mxu1  ;;  %v698_v22 = vsel %vm376_vm1, %v2503_v21, 0 }
 0x14f   : > { %2153 = vmatmul.mubr.msk.bf16.vlgmr.msra.gmra.mxu0 %vm376_vm1, %v2496_v16 }
 0x150   : > { %2163 = vmatpush3.bf16.xpose.msra.mxu0 %v698_v22  ;;  %2164 = vmatprep.mubr.msk.bf16.mxu0 %vm2393_vm0, %v2392_v1 }
 0x151   : > { %2174 = vmatprep.subr.bf16.mxu0 %v2392_v1 }
 0x157   : > { %2165 = vmatmul.mubr.msk.bf16.vlgmr.msra.gmra.mxu0 %vm376_vm1, %v2503_v21 }
 0x158   : > { %2176 = vmatprep.mubr.msk.bf16.mxu0 %vm2393_vm0, %v2392_v1 }
 0x19f   : > { %v520_v23 = vpop.f32.mrf.mxu0 }
 0x1a0   : > { %vm526_vm3 = vcmp.gt.f32.partialorder %v520_v23, 0.0  ;;  %v527_v24 = vmul.f32 0.2, %v520_v23 }
 0x1a1   : > { %v2142_v26 = vpop.f32.mrf.mxu0 }
 0x1a2   : > { %v528_v27 = vsel %vm526_vm3, %v520_v23, %v527_v24 }
 0x1a3   : > { %v529_v28 = vadd.f32 %v528_v27, %v357_v25  ;;  %v523_v29 = vpop.f32.mrf.mxu0  ;;  %v652_v27 = vsel %vm546_vm2, %v2496_v16, 0 }
 0x1a5   : > { %v531_v30 = vsel %vm530_vm4, %v529_v28, -inf  ;;  %v2143_v31 = vpop.f32.mrf.mxu0 }
 0x1a6   : > { %532 = vmax.xlane.f32.xlu1 %v531_v30 }
 0x1b9   : > { %v2521_v32 = vpop.permute.xlu1 %802 }
 0x1ba   : > { %v805_v33 = vsel %vm376_vm1, %v2521_v32, 0 }
 0x1bb   : > { %2175 = vmatpush3.bf16.xpose.msra.mxu0 %v805_v33 }
 0x1bc   : > { %2186 = vmatprep.subr.bf16.mxu0 %v2392_v1 }
 0x1c2   : > { %2177 = vmatmul.mubr.msk.bf16.vlgmr.msra.gmra.mxu0 %vm376_vm1, %v2521_v32 }
 0x1c3   : > { %2202 = vmatprep.mubr.msk.bf16.mxu0 %vm2393_vm0, %v2392_v1  ;;  %2187 = vmatpush3.bf16.msra.mxu0 %v2300_v54  ;;  %v2310_v54 = vld [vmem:[%s2833_s7 + $0x74] ss:$8 sps:$4 sm:$0xff]  }
 0x1c4   : > { %2188 = vmatprep.subr.bf16.mxu0 %v2392_v1 }
 0x1c7   : > { %2189 = vmatpush3.bf16.msra.mxu0 %v2301_v55 }
 0x1c8   : > { %2190 = vmatprep.subr.bf16.mxu0 %v2392_v1 }
 0x1cb   : > { %2191 = vmatpush3.bf16.msra.mxu0 %v2302_v58 }
 0x1cc   : > { %2192 = vmatprep.subr.bf16.mxu0 %v2392_v1 }
 0x1cf   : > { %2193 = vmatpush3.bf16.msra.mxu0 %v2303_v59  ;;  %v2311_v59 = vld [vmem:[%s2833_s7 + $0x60] ss:$8 sps:$4 sm:$0xff]  }
 0x1d0   : > { %2194 = vmatprep.subr.bf16.mxu0 %v2392_v1 }
 0x1d3   : > { %2195 = vmatpush3.bf16.msra.mxu0 %v2304_v60 }
 0x1d4   : > { %2196 = vmatprep.subr.bf16.mxu0 %v2392_v1 }
 0x1d7   : > { %2197 = vmatpush3.bf16.msra.mxu0 %v2305_v61  ;;  %v2316_v61 = vld [vmem:[%s2833_s7 + $0x54] ss:$8 sps:$4 sm:$0xff]  }
 0x1d8   : > { %2198 = vmatprep.subr.bf16.mxu0 %v2392_v1 }
 0x1db   : > { %2199 = vmatpush3.bf16.msra.mxu0 %v2306_v62 }
 0x1dc   : > { %2200 = vmatprep.subr.bf16.mxu0 %v2392_v1 }
 0x1df   : > { %2201 = vmatpush3.bf16.msra.mxu0 %v2307_v63 }
 0x1e0   : > { %2206 = vmatprep.subr.bf16.mxu0 %v2392_v1 }
 0x1e2   : > { %2203 = vmatmul.mubr.bf16.vlgmr.msra.gmra.mxu0 %v924_v2  ;;  %v2314_v2 = vld [vmem:[%s2833_s7 + $0x50] ss:$8 sps:$4 sm:$0xff]  }
 0x1e3   : > { %2208 = vmatprep.mubr.msk.bf16.mxu0 %vm2393_vm0, %v2392_v1 }
 0x20f   : > { %v627_v34 = vpop.f32.mrf.mxu0 }
 0x210   : > { %vm633_vm5 = vcmp.gt.f32.partialorder %v627_v34, 0.0  ;;  %v634_v35 = vmul.f32 0.2, %v627_v34 }
 0x211   : > { %v2154_v37 = vpop.f32.mrf.mxu0 }
 0x212   : > { %v635_v38 = vsel %vm633_vm5, %v627_v34, %v634_v35 }
 0x213   : > { %v630_v39 = vpop.f32.mrf.mxu0  ;;  %v636_v40 = vadd.f32 %v635_v38, %v358_v36 }
 0x215   : > { %v2155_v41 = vpop.f32.mrf.mxu0  ;;  %v637_v42 = vsel %vm530_vm4, %v636_v40, -inf }
 0x216   : > { %638 = vmax.xlane.f32.xlu0 %v637_v42  ;;  %v759_v42 = vsel %vm546_vm2, %v2503_v21, 0 }
 0x217   : > { %v734_v43 = vpop.f32.mrf.mxu0 }
 0x218   : > { %vm740_vm6 = vcmp.gt.f32.partialorder %v734_v43, 0.0  ;;  %v741_v44 = vmul.f32 0.2, %v734_v43 }
 0x219   : > { %v2166_v45 = vpop.f32.mrf.mxu0 }
 0x21a   : > { %v742_v46 = vsel %vm740_vm6, %v734_v43, %v741_v44 }
 0x21b   : > { %v743_v47 = vadd.f32 %v742_v46, %v357_v25  ;;  %v737_v48 = vpop.f32.mrf.mxu0  ;;  %v866_v46 = vsel %vm546_vm2, %v2521_v32, 0  ;;  %v2308_v32 = vld [vmem:[%s2833_s7 + $0x70] ss:$8 sps:$4 sm:$0xff]  }
 0x21d   : > { %v744_v49 = vsel %vm530_vm4, %v743_v47, -inf  ;;  %v2167_v50 = vpop.f32.mrf.mxu0 }
 0x21e   : > { %745 = vmax.xlane.f32.xlu0 %v744_v49 }
 0x22f   : > { %v533_v51 = vpop.xlane.xlu1 %532 }
 0x230   : > { %v534_v52 = vsub.f32 %v529_v28, %v533_v51 }
 0x232   : > { %v535_v53 = vmul.f32 1.442695, %v534_v52 }
 0x234   : > { %2344 = vpow2.f32 %v535_v53 }
 0x241   : > { %v2345_v56 = vpop.eup %2344 }
 0x242   : > { %v537_v57 = vsel %vm530_vm4, %v2345_v56, 0.0 }
 0x243   : > { %538 = vadd.xlane.f32.xlu0 %v537_v57 }
 0x282   : > { %v841_v3 = vpop.f32.mrf.mxu0 }
 0x283   : > { %vm847_vm7 = vcmp.gt.f32.partialorder %v841_v3, 0.0  ;;  %v848_v4 = vmul.f32 0.2, %v841_v3 }
 0x284   : > { %v2178_v5 = vpop.f32.mrf.mxu0 }
 0x285   : > { %v849_v6 = vsel %vm847_vm7, %v841_v3, %v848_v4  ;;  %v2319_v3 = vld [vmem:[%s2833_s7 + $0x44] ss:$8 sps:$4 sm:$0xff]  }
 0x286   : > { %v844_v7 = vpop.f32.mrf.mxu0  ;;  %v850_v8 = vadd.f32 %v849_v6, %v358_v36 }
 0x287   : > { %v2317_v7 = vld [vmem:[%s2833_s7 + $0x40] ss:$8 sps:$4 sm:$0xff]  }
 0x288   : > { %v2179_v9 = vpop.f32.mrf.mxu0  ;;  %v851_v10 = vsel %vm530_vm4, %v850_v8, -inf }
 0x289   : > { %852 = vmax.xlane.f32.xlu1 %v851_v10  ;;  %v2322_v9 = vld [vmem:[%s2833_s7 + $0x34] ss:$8 sps:$4 sm:$0xff]  }
 0x29f   : > { %v639_v11 = vpop.xlane.xlu0 %638 }
 0x2a0   : > { %v640_v12 = vsub.f32 %v636_v40, %v639_v11 }
 0x2a2   : > { %v641_v13 = vmul.f32 1.442695, %v640_v12  ;;  %v2584_v31 = vpop.f32.mrf.mxu0  ;;  %v2320_v12 = vld [vmem:[%s2833_s7 + $0x30] ss:$8 sps:$4 sm:$0xff]  }
 0x2a4   : > { %2346 = vpow2.f32 %v641_v13  ;;  %v2204_v33 = vpop.f32.mrf.mxu0  ;;  %v2325_v13 = vld [vmem:[%s2833_s7 + $0x24] ss:$8 sps:$4 sm:$0xff]  }
 0x2a6   : > { %v1010_v36 = vpop.f32.mrf.mxu0 }
 0x2a7   : > { %v746_v14 = vpop.xlane.xlu0 %745 }
 0x2a8   : > { %v747_v15 = vsub.f32 %v743_v47, %v746_v14  ;;  %v2205_v37 = vpop.f32.mrf.mxu0  ;;  %v2323_v14 = vld [vmem:[%s2833_s7 + $0x20] ss:$8 sps:$4 sm:$0xff]  }
 0x2aa   : > { %v748_v17 = vmul.f32 1.442695, %v747_v15  ;;  %v2328_v15 = vld [vmem:[%s2833_s7 + $0x14] ss:$8 sps:$4 sm:$0xff]  }
 0x2ac   : > { %2348 = vpow2.f32 %v748_v17  ;;  %v2326_v17 = vld [vmem:[%s2833_s7 + $0x10] ss:$8 sps:$4 sm:$0xff]  }
 0x2b1   : > { %v2347_v18 = vpop.eup %2346 }
 0x2b2   : > { %v643_v19 = vsel %vm530_vm4, %v2347_v18, 0.0 }
 0x2b3   : > { %644 = vadd.xlane.f32.xlu1 %v643_v19  ;;  %v2329_v19 = vld [vmem:[%s2833_s7] ss:$8 sps:$4 sm:$0xff]  }
 0x2b9   : > { %v2349_v20 = vpop.eup %2348 }
 0x2ba   : > { %v750_v22 = vsel %vm530_vm4, %v2349_v20, 0.0 }
 0x2bb   : > { %751 = vadd.xlane.f32.xlu0 %v750_v22  ;;  %v2332_v22 = vld [vmem:[%s2833_s7 + $0xb0] ss:$8 sps:$4 sm:$0xff]  }
 0x2cc   : > { %v539_v23 = vpop.xlane.xlu0 %538 }
 0x2cd   : > { %2350 = vrcp.f32 %v539_v23  ;;  %v2337_v23 = vld [vmem:[%s2833_s7 + $0xa4] ss:$8 sps:$4 sm:$0xff]  }
 0x2d1   : > { %1028 = vrot.lane.b32.xlu0 %v2584_v31, %s2396_s29 }
 0x2da   : > { %v2351_v24 = vpop.eup %2350 }
 0x2db   : > { %v541_v25 = vmul.f32 %v2351_v24, %v2345_v56  ;;  %v2313_v56 = vld [vmem:[%s2833_s7 + $0x64] ss:$8 sps:$4 sm:$0xff]   ;;  %v2335_v24 = vld [vmem:[%s2833_s7 + $0xa0] ss:$8 sps:$4 sm:$0xff]  }
 0x2dd   : > { %v542_v26 = vpack.c.bf16 %v541_v25, %v541_v25  ;;  %v2340_v25 = vld [vmem:[%s2833_s7 + $0x94] ss:$8 sps:$4 sm:$0xff]  }
 0x2df   : > { %2147 = vmatmul.mubr.msk.bf16.vlgmr.msra.gmra.mxu1 %vm530_vm4, %v542_v26  ;;  %v2338_v26 = vld [vmem:[%s2833_s7 + $0x90] ss:$8 sps:$4 sm:$0xff]  }
 0x2e0   : > { %2157 = vmatpush3.bf16.msra.mxu1 %v652_v27  ;;  %2158 = vmatprep.mubr.msk.bf16.mxu1 %vm2393_vm0, %v2392_v1  ;;  %v2343_v27 = vld [vmem:[%s2833_s7 + $0x84] ss:$8 sps:$4 sm:$0xff]  }
 0x2e1   : > { %2168 = vmatprep.subr.bf16.mxu1 %v2392_v1 }
 0x312   : > { %v853_v28 = vpop.xlane.xlu1 %852 }
 0x313   : > { %v854_v29 = vsub.f32 %v850_v8, %v853_v28  ;;  %v2341_v28 = vld [vmem:[%s2833_s7 + $0x80] ss:$8 sps:$4 sm:$0xff]  }
 0x315   : > { %v855_v30 = vmul.f32 1.442695, %v854_v29 }
 0x317   : > { %2352 = vpow2.f32 %v855_v30 }
 0x324   : > { %v2353_v34 = vpop.eup %2352 }
 0x325   : > { %v857_v35 = vsel %vm530_vm4, %v2353_v34, 0.0 }
 0x326   : > { %858 = vadd.xlane.f32.xlu1 %v857_v35 }
 0x337   : > { %1023 = vrot.lane.b32.xlu1 %v2584_v31, %s2395_s15 }
 0x33b   : > { %1018 = vrot.lane.b32.xlu1 %v2584_v31, %s2394_s19 }
 0x33c   : > { %v645_v16 = vpop.xlane.xlu1 %644 }
 0x33d   : > { %2354 = vrcp.f32 %v645_v16 }
 0x344   : > { %v752_v38 = vpop.xlane.xlu0 %751 }
 0x345   : > { %2356 = vrcp.f32 %v752_v38 }
 0x348   : > { %v1029_v29 = vpop.permute.xlu0 %1028 }
 0x34a   : > { %v2355_v39 = vpop.eup %2354 }
 0x34b   : > { %v647_v40 = vmul.f32 %v2355_v39, %v2347_v18  ;;  %v2331_v18 = vld [vmem:[%s2833_s7 + $0x4] ss:$8 sps:$4 sm:$0xff]  }
 0x34d   : > { %v648_v41 = vpack.c.bf16 %v647_v40, %v647_v40 }
 0x34f   : > { %2159 = vmatmul.mubr.msk.bf16.vlgmr.msra.gmra.mxu1 %vm530_vm4, %v648_v41 }
 0x350   : > { %2169 = vmatpush3.bf16.msra.mxu1 %v759_v42  ;;  %2170 = vmatprep.mubr.msk.bf16.mxu1 %vm2393_vm0, %v2392_v1 }
 0x351   : > { %2180 = vmatprep.subr.bf16.mxu1 %v2392_v1 }
 0x352   : > { %v2357_v43 = vpop.eup %2356 }
 0x353   : > { %v754_v44 = vmul.f32 %v2357_v43, %v2349_v20  ;;  %v2334_v20 = vld [vmem:[%s2833_s7 + $0xb4] ss:$8 sps:$4 sm:$0xff]  }
 0x355   : > { %v755_v45 = vpack.c.bf16 %v754_v44, %v754_v44 }
 0x357   : > { %2171 = vmatmul.mubr.msk.bf16.vlgmr.msra.gmra.mxu1 %vm530_vm4, %v755_v45 }
 0x358   : > { %2181 = vmatpush3.bf16.msra.mxu1 %v866_v46  ;;  %2182 = vmatprep.mubr.msk.bf16.mxu1 %vm2393_vm0, %v2392_v1 }
 0x359   : > { %1204 = vmatprep.subr.bf16.mxu1 %v2310_v54 }
 0x39f   : > { %v2604_v21 = vpop.f32.mrf.mxu1 }
 0x3a0   : > { %v1013_v42 = vmax.f32 %v2604_v21, 0.0 }
 0x3a1   : > { %v2148_v47 = vpop.f32.mrf.mxu1 }
 0x3a3   : > { %v586_v48 = vpop.f32.mrf.mxu1 }
 0x3a5   : > { %v2149_v49 = vpop.f32.mrf.mxu1 }
 0x3af   : > { %v859_v50 = vpop.xlane.xlu1 %858 }
 0x3b0   : > { %2358 = vrcp.f32 %v859_v50  ;;  %v1350_v50 = vpack.c.bf16 %v1013_v42, %v1013_v42 }
 0x3b2   : > { %v1415_v54 = vsel %vm546_vm2, %v1350_v50, 0 }
 0x3b3   : > { %v1024_v35 = vpop.permute.xlu1 %1023 }
 0x3b7   : > { %v1019_v40 = vpop.permute.xlu1 %1018 }
 0x3bd   : > { %v2359_v51 = vpop.eup %2358 }
 0x3be   : > { %v861_v52 = vmul.f32 %v2359_v51, %v2353_v34 }
 0x3c0   : > { %v862_v53 = vpack.c.bf16 %v861_v52, %v861_v52 }
 0x3c2   : > { %2183 = vmatmul.mubr.msk.bf16.vlgmr.msra.gmra.mxu1 %vm530_vm4, %v862_v53 }
 0x3c3   : > { %1205 = vmatpush1.bf16.msra.mxu1 %v2308_v32 }
 0x3c4   : > { %1206 = vmatprep.subr.bf16.mxu1 %v2313_v56 }
 0x3c7   : > { %1207 = vmatpush1.bf16.msra.mxu1 %v2311_v59 }
 0x3c8   : > { %1208 = vmatprep.subr.bf16.mxu1 %v2316_v61 }
 0x3cb   : > { %1209 = vmatpush1.bf16.msra.mxu1 %v2314_v2 }
 0x3cc   : > { %1210 = vmatprep.subr.bf16.mxu1 %v2319_v3 }
 0x3cf   : > { %1211 = vmatpush1.bf16.msra.mxu1 %v2317_v7 }
 0x3d0   : > { %1212 = vmatprep.subr.bf16.mxu1 %v2322_v9 }
 0x3d3   : > { %1213 = vmatpush1.bf16.msra.mxu1 %v2320_v12 }
 0x3d4   : > { %1214 = vmatprep.subr.bf16.mxu1 %v2325_v13 }
 0x3d7   : > { %1215 = vmatpush1.bf16.msra.mxu1 %v2323_v14  ;;  %v1358_v14 = vsel %vm376_vm1, %v1350_v50, 0 }
 0x3d8   : > { %1216 = vmatprep.subr.bf16.mxu1 %v2328_v15 }
 0x3db   : > { %1217 = vmatpush1.bf16.msra.mxu1 %v2326_v17 }
 0x3dc   : > { %1218 = vmatprep.subr.bf16.mxu1 %v2331_v18 }
 0x3df   : > { %1219 = vmatpush1.bf16.msra.mxu1 %v2329_v19 }
 0x3e0   : > { %1228 = vmatprep.subr.bf16.mxu1 %v2334_v20 }
 0x3e3   : > { %1229 = vmatpush2.bf16.msra.mxu1 %v2332_v22 }
 0x3e4   : > { %1230 = vmatprep.subr.bf16.mxu1 %v2337_v23 }
 0x3e7   : > { %1231 = vmatpush2.bf16.msra.mxu1 %v2335_v24 }
 0x3e8   : > { %1232 = vmatprep.subr.bf16.mxu1 %v2340_v25 }
 0x3eb   : > { %1233 = vmatpush2.bf16.msra.mxu1 %v2338_v26 }
 0x3ec   : > { %1234 = vmatprep.subr.bf16.mxu1 %v2343_v27 }
 0x3ef   : > { %1235 = vmatpush2.bf16.msra.mxu1 %v2341_v28 }
 0x3f0   : > { %2224 = vmatprep.subr.bf16.mxu1 %v2392_v1 }
 0x40f   : > { %v688_v55 = vpop.f32.mrf.mxu1 }
 0x410   : > { %v2616_v57 = vmax.f32 %v688_v55, 0.0 }
 0x411   : > { %v2160_v58 = vpop.f32.mrf.mxu1 }
 0x412   : > { %v2623_v60 = vpack.c.bf16 %v2616_v57, %v2616_v57 }
 0x413   : > { %v691_v62 = vpop.f32.mrf.mxu1 }
 0x414   : > { %v1251_v63 = vsel %vm376_vm1, %v2623_v60, 0  ;;  %v1308_v58 = vsel %vm546_vm2, %v2623_v60, 0 }
 0x415   : > { %v2161_v0 = vpop.f32.mrf.mxu1  ;;  %2207 = vmatpush3.bf16.xpose.msra.mxu0 %v1251_v63 }
 0x416   : > { %2212 = vmatprep.subr.bf16.mxu0 %v2392_v1 }
 0x417   : > { %v795_v4 = vpop.f32.mrf.mxu1 }
 0x418   : > { %v1015_v5 = vadd.f32 %v2584_v31, %v795_v4  ;;  %v1021_v41 = vadd.f32 %v1019_v40, %v795_v4 }
 0x419   : > { %v2172_v6 = vpop.f32.mrf.mxu1 }
 0x41a   : > { %v2641_v8 = vmax.f32 %v1015_v5, 0.0  ;;  %v2704_v44 = vmax.f32 %v1021_v41, 0.0 }
 0x41b   : > { %v798_v10 = vpop.f32.mrf.mxu1 }
 0x41c   : > { %1038 = vrot.lane.b32.xlu1 %v2641_v8, %s2395_s15  ;;  %v2745_v19 = vpack.c.bf16 %v2641_v8, %v2641_v8  ;;  %v2765_v25 = vpack.c.bf16 %v2704_v44, %v2704_v44 }
 0x41d   : > { %v2173_v11 = vpop.f32.mrf.mxu1 }
 0x41e   : > { %v1570_v22 = vsel %vm376_vm1, %v2745_v19, 0  ;;  %v1782_v26 = vsel %vm376_vm1, %v2765_v25, 0 }
 0x482   : > { %v902_v30 = vpop.f32.mrf.mxu1 }
 0x483   : > { %v1031_v31 = vadd.f32 %v1029_v29, %v902_v30  ;;  %v1026_v37 = vadd.f32 %v1024_v35, %v902_v30 }
 0x484   : > { %v2184_v33 = vpop.f32.mrf.mxu1 }
 0x485   : > { %v2694_v34 = vmax.f32 %v1031_v31, 0.0  ;;  %v2699_v39 = vmax.f32 %v1026_v37, 0.0 }
 0x486   : > { %v905_v36 = vpop.f32.mrf.mxu1 }
 0x487   : > { %v2291_v16 = vpack.i.bf16 %v2694_v34, %v2616_v57  ;;  %v2735_v15 = vpack.c.bf16 %v2699_v39, %v2699_v39  ;;  %v2755_v23 = vpack.c.bf16 %v2694_v34, %v2694_v34 }
 0x488   : > { %v2185_v38 = vpop.f32.mrf.mxu1 }
 0x489   : > { %2292 = vrot.lane.b32.xlu0 %v2291_v16, %s2396_s29  ;;  %v1464_v18 = vsel %vm376_vm1, %v2735_v15, 0  ;;  %v1675_v8 = vsel %vm376_vm1, %v2755_v23, 0 }
 0x48d   : > { %1042 = vrot.lane.b32.xlu0 %v2699_v39, %s2394_s19 }
 0x48e   : > { %v1039_v47 = vpop.permute.xlu1 %1038 }
 0x4fb   : > { %v2293_v43 = vpop.permute.xlu0 %2292 }
 0x4fc   : > { %v2295_v45 = vunpack.i.h.bf16 %v2293_v43  ;;  %v2294_v46 = vunpack.i.l.bf16 %v2293_v43 }
 0x4fe   : > { %v1054_v48 = vsel %vm376_vm1, %v2704_v44, %v2295_v45  ;;  %v1049_v49 = vsel %vm376_vm1, %v1013_v42, %v2294_v46 }
 0x4ff   : > { %v1080_v51 = vpack.c.bf16 %v1054_v48, %v1054_v48  ;;  %v1043_v52 = vpop.permute.xlu0 %1042  ;;  %v1051_v53 = vsel %vm1050_vm8, %v1049_v49, %v1039_v47 }
 0x500   : > { %v1053_v21 = vsel %vm1052_vm9, %v1051_v53, %v1043_v52 }
 0x501   : > { %v1079_v32 = vpack.c.bf16 %v1053_v21, %v1053_v21  ;;  %2051 = vmatprep.mubr.msk.bf16.mxu1 %vm1050_vm8, %v1080_v51 }
 0x503   : > { %1237 = vmatmul.mubr.bf16.vlgmr.msra.gmra.mxu1 %v1079_v32 }
 0x504   : > { %2225 = vmatpush3.bf16.msra.mxu1 %v1415_v54  ;;  %2226 = vmatprep.mubr.msk.bf16.mxu1 %vm2393_vm0, %v2392_v1 }
 0x505   : > { %2236 = vmatprep.subr.bf16.mxu1 %v2392_v1 }
 0x5c3   : > { %v1238_v55 = vpop.f32.mrf.mxu1 }
 0x5c4   : > { %v1245_v56 = vpack.c.bf16 %v1238_v55, %v1238_v55 }
 0x5c5   : > { %v1240_v57 = vpop.f32.mrf.mxu1 }
 0x5c6   : > { %2209 = vmatmul.mubr.msk.bf16.vlgmr.msra.gmra.mxu0 %vm376_vm1, %v1245_v56  ;;  %v1669_v9 = vpack.c.bf16 %v1240_v57, %v1240_v57 }
 0x5c7   : > { %2213 = vmatpush3.bf16.msra.mxu0 %v1308_v58  ;;  %v1242_v59 = vpop.f32.mrf.mxu1  ;;  %2214 = vmatprep.mubr.msk.bf16.mxu0 %vm2393_vm0, %v2392_v1 }
 0x5c8   : > { %2218 = vmatprep.subr.bf16.mxu0 %v2392_v1 }
 0x5c9   : > { %v1243_v61 = vpop.f32.mrf.mxu1 }
 0x686   : > { %v1287_v62 = vpop.f32.mrf.mxu0 }
 0x687   : > { %v1293_v63 = vsel %vm530_vm4, %v1287_v62, -inf }
 0x688   : > { %1294 = vmax.xlane.f32.xlu1 %v1293_v63  ;;  %v2210_v0 = vpop.f32.mrf.mxu0 }
 0x68a   : > { %v1290_v2 = vpop.f32.mrf.mxu0 }
 0x68c   : > { %v2211_v3 = vpop.f32.mrf.mxu0 }
 0x699   : > { %1458 = vrot.lane.b32.xlu1 %v1245_v56, %s2395_s15 }
 0x69d   : > { %1564 = vrot.lane.b32.xlu1 %v1245_v56, %s2396_s29 }
 0x711   : > { %v1295_v60 = vpop.xlane.xlu1 %1294 }
 0x712   : > { %v1296_v4 = vsub.f32 %v1287_v62, %v1295_v60 }
 0x714   : > { %v1297_v5 = vmul.f32 1.442695, %v1296_v4 }
 0x715   : > { %v1459_v20 = vpop.permute.xlu1 %1458 }
 0x716   : > { %2360 = vpow2.f32 %v1297_v5 }
 0x719   : > { %v1565_v24 = vpop.permute.xlu1 %1564 }
 0x723   : > { %v2361_v6 = vpop.eup %2360 }
 0x724   : > { %v1299_v7 = vsel %vm530_vm4, %v2361_v6, 0.0 }
 0x725   : > { %1300 = vadd.xlane.f32.xlu0 %v1299_v7 }
 0x73b   : > { %1352 = vrot.lane.b32.xlu0 %v1245_v56, %s2394_s19 }
 0x73f   : > { %1776 = vrot.lane.b32.xlu0 %v1669_v9, %s2394_s19 }
 0x7ae   : > { %v1301_v10 = vpop.xlane.xlu0 %1300 }
 0x7af   : > { %2362 = vrcp.f32 %v1301_v10 }
 0x7b2   : > { %v1353_v17 = vpop.permute.xlu0 %1352 }
 0x7b6   : > { %v1777_v27 = vpop.permute.xlu0 %1776 }
 0x7bc   : > { %v2363_v11 = vpop.eup %2362 }
 0x7bd   : > { %v1303_v12 = vmul.f32 %v2363_v11, %v2361_v6 }
 0x7bf   : > { %v1304_v13 = vpack.c.bf16 %v1303_v12, %v1303_v12 }
 0x7c1   : > { %2215 = vmatmul.mubr.msk.bf16.vlgmr.msra.gmra.mxu0 %vm530_vm4, %v1304_v13 }
 0x7c2   : > { %2219 = vmatpush3.bf16.xpose.msra.mxu0 %v1358_v14  ;;  %2220 = vmatprep.mubr.msk.bf16.mxu0 %vm2393_vm0, %v2392_v1 }
 0x7c3   : > { %2230 = vmatprep.subr.bf16.mxu0 %v2392_v1 }
 0x7c9   : > { %2221 = vmatmul.mubr.msk.bf16.vlgmr.msra.gmra.mxu0 %vm376_vm1, %v1353_v17 }
 0x7ca   : > { %2231 = vmatpush3.bf16.xpose.msra.mxu0 %v1464_v18  ;;  %2232 = vmatprep.mubr.msk.bf16.mxu0 %vm2393_vm0, %v2392_v1 }
 0x7cb   : > { %2242 = vmatprep.subr.bf16.mxu0 %v2392_v1 }
 0x7d1   : > { %2233 = vmatmul.mubr.msk.bf16.vlgmr.msra.gmra.mxu0 %vm376_vm1, %v1459_v20 }
 0x7d2   : > { %2243 = vmatpush3.bf16.xpose.msra.mxu0 %v1570_v22  ;;  %2244 = vmatprep.mubr.msk.bf16.mxu0 %vm2393_vm0, %v2392_v1 }
 0x7d3   : > { %2254 = vmatprep.subr.bf16.mxu0 %v2392_v1 }
 0x7d9   : > { %2245 = vmatmul.mubr.msk.bf16.vlgmr.msra.gmra.mxu0 %vm376_vm1, %v1565_v24 }
 0x7da   : > { %2255 = vmatpush3.bf16.xpose.msra.mxu0 %v1675_v8  ;;  %2256 = vmatprep.mubr.msk.bf16.mxu0 %vm2393_vm0, %v2392_v1 }
 0x7db   : > { %2266 = vmatprep.subr.bf16.mxu0 %v2392_v1 }
 0x7e1   : > { %2257 = vmatmul.mubr.msk.bf16.vlgmr.msra.gmra.mxu0 %vm376_vm1, %v1669_v9 }
 0x7e2   : > { %2267 = vmatpush3.bf16.xpose.msra.mxu0 %v1782_v26  ;;  %2268 = vmatprep.mubr.msk.bf16.mxu0 %vm2393_vm0, %v2392_v1 }
 0x7e9   : > { %2269 = vmatmul.mubr.msk.bf16.vlgmr.msra.gmra.mxu0 %vm376_vm1, %v1777_v27 }
 0x881   : > { %v2773_v28 = vpop.f32.mrf.mxu0 }
 0x883   : > { %v2216_v29 = vpop.f32.mrf.mxu0 }
 0x885   : > { %v1347_v30 = vpop.f32.mrf.mxu0 }
 0x886   : > { %v1521_v30 = vsel %vm546_vm2, %v2735_v15, 0 }
 0x887   : > { %v2217_v31 = vpop.f32.mrf.mxu0 }
 0x889   : > { %v1394_v33 = vpop.f32.mrf.mxu0 }
 0x88a   : > { %v1400_v34 = vsel %vm530_vm4, %v1394_v33, -inf }
 0x88b   : > { %1401 = vmax.xlane.f32.xlu1 %v1400_v34  ;;  %v2222_v35 = vpop.f32.mrf.mxu0 }
 0x88d   : > { %v1397_v36 = vpop.f32.mrf.mxu0 }
 0x88e   : > { %v1627_v36 = vsel %vm546_vm2, %v2745_v19, 0 }
 0x88f   : > { %v2223_v37 = vpop.f32.mrf.mxu0 }
 0x891   : > { %v1500_v16 = vpop.f32.mrf.mxu0 }
 0x892   : > { %v1506_v38 = vsel %vm530_vm4, %v1500_v16, -inf }
 0x893   : > { %1507 = vmax.xlane.f32.xlu0 %v1506_v38  ;;  %v2234_v39 = vpop.f32.mrf.mxu0 }
 0x894   : > { %v1732_v39 = vsel %vm546_vm2, %v2755_v23, 0 }
 0x895   : > { %v1503_v40 = vpop.f32.mrf.mxu0 }
 0x897   : > { %v2235_v41 = vpop.f32.mrf.mxu0 }
 0x899   : > { %v1606_v42 = vpop.f32.mrf.mxu0 }
 0x89a   : > { %v1612_v43 = vsel %vm530_vm4, %v1606_v42, -inf }
 0x89b   : > { %1613 = vmax.xlane.f32.xlu0 %v1612_v43  ;;  %v2246_v44 = vpop.f32.mrf.mxu0 }
 0x89d   : > { %v1609_v45 = vpop.f32.mrf.mxu0 }
 0x89f   : > { %v2247_v46 = vpop.f32.mrf.mxu0 }
 0x8a1   : > { %v1711_v47 = vpop.f32.mrf.mxu0 }
 0x8a2   : > { %v1717_v48 = vsel %vm530_vm4, %v1711_v47, -inf }
 0x8a3   : > { %1718 = vmax.xlane.f32.xlu1 %v1717_v48  ;;  %v2258_v49 = vpop.f32.mrf.mxu0 }
 0x8a5   : > { %v1714_v50 = vpop.f32.mrf.mxu0 }
 0x8a7   : > { %v2259_v51 = vpop.f32.mrf.mxu0 }
 0x8a9   : > { %v1818_v52 = vpop.f32.mrf.mxu0 }
 0x8aa   : > { %v1824_v53 = vsel %vm530_vm4, %v1818_v52, -inf }
 0x8ab   : > { %1825 = vmax.xlane.f32.xlu0 %v1824_v53  ;;  %v2270_v21 = vpop.f32.mrf.mxu0 }
 0x8ad   : > { %v1821_v32 = vpop.f32.mrf.mxu0 }
 0x8af   : > { %v2271_v54 = vpop.f32.mrf.mxu0 }
 0x914   : > { %v1402_v55 = vpop.xlane.xlu1 %1401 }
 0x915   : > { %v1403_v56 = vsub.f32 %v1394_v33, %v1402_v55 }
 0x917   : > { %v1404_v57 = vmul.f32 1.442695, %v1403_v56 }
 0x919   : > { %2364 = vpow2.f32 %v1404_v57 }
 0x91c   : > { %v1508_v58 = vpop.xlane.xlu0 %1507 }
 0x91d   : > { %v1509_v59 = vsub.f32 %v1500_v16, %v1508_v58 }
 0x91f   : > { %v1510_v61 = vmul.f32 1.442695, %v1509_v59 }
 0x921   : > { %2366 = vpow2.f32 %v1510_v61 }
 0x924   : > { %v1614_v62 = vpop.xlane.xlu0 %1613 }
 0x925   : > { %v1615_v63 = vsub.f32 %v1606_v42, %v1614_v62  ;;  %v1839_v42 = vsel %vm546_vm2, %v2765_v25, 0 }
 0x926   : > { %v2365_v0 = vpop.eup %2364 }
 0x927   : > { %v1616_v2 = vmul.f32 1.442695, %v1615_v63  ;;  %v1406_v3 = vsel %vm530_vm4, %v2365_v0, 0.0 }
 0x928   : > { %1407 = vadd.xlane.f32.xlu1 %v1406_v3 }
 0x929   : > { %2368 = vpow2.f32 %v1616_v2 }
 0x92c   : > { %v1719_v60 = vpop.xlane.xlu1 %1718 }
 0x92d   : > { %v1720_v4 = vsub.f32 %v1711_v47, %v1719_v60 }
 0x92e   : > { %v2367_v5 = vpop.eup %2366 }
 0x92f   : > { %v1721_v6 = vmul.f32 1.442695, %v1720_v4  ;;  %v1512_v7 = vsel %vm530_vm4, %v2367_v5, 0.0 }
 0x930   : > { %1513 = vadd.xlane.f32.xlu0 %v1512_v7 }
 0x931   : > { %2370 = vpow2.f32 %v1721_v6 }
 0x934   : > { %v1826_v9 = vpop.xlane.xlu0 %1825 }
 0x935   : > { %v1827_v10 = vsub.f32 %v1818_v52, %v1826_v9 }
 0x936   : > { %v2369_v11 = vpop.eup %2368 }
 0x937   : > { %v1828_v12 = vmul.f32 1.442695, %v1827_v10  ;;  %v1618_v13 = vsel %vm530_vm4, %v2369_v11, 0.0 }
 0x938   : > { %1619 = vadd.xlane.f32.xlu1 %v1618_v13 }
 0x939   : > { %2372 = vpow2.f32 %v1828_v12 }
 0x93e   : > { %v2371_v14 = vpop.eup %2370 }
 0x93f   : > { %v1723_v17 = vsel %vm530_vm4, %v2371_v14, 0.0 }
 0x940   : > { %1724 = vadd.xlane.f32.xlu0 %v1723_v17 }
 0x946   : > { %v2373_v18 = vpop.eup %2372 }
 0x947   : > { %v1830_v20 = vsel %vm530_vm4, %v2373_v18, 0.0 }
 0x948   : > { %1831 = vadd.xlane.f32.xlu1 %v1830_v20 }
 0x9b1   : > { %v1408_v22 = vpop.xlane.xlu1 %1407 }
 0x9b2   : > { %2374 = vrcp.f32 %v1408_v22 }
 0x9b9   : > { %v1514_v24 = vpop.xlane.xlu0 %1513 }
 0x9ba   : > { %2376 = vrcp.f32 %v1514_v24 }
 0x9bf   : > { %v2375_v8 = vpop.eup %2374 }
 0x9c0   : > { %v1410_v26 = vmul.f32 %v2375_v8, %v2365_v0 }
 0x9c1   : > { %v1620_v27 = vpop.xlane.xlu1 %1619 }
 0x9c2   : > { %2378 = vrcp.f32 %v1620_v27  ;;  %v1411_v29 = vpack.c.bf16 %v1410_v26, %v1410_v26 }
 0x9c4   : > { %2227 = vmatmul.mubr.msk.bf16.vlgmr.msra.gmra.mxu1 %vm530_vm4, %v1411_v29 }
 0x9c5   : > { %2237 = vmatpush3.bf16.msra.mxu1 %v1521_v30  ;;  %2238 = vmatprep.mubr.msk.bf16.mxu1 %vm2393_vm0, %v2392_v1 }
 0x9c6   : > { %2248 = vmatprep.subr.bf16.mxu1 %v2392_v1 }
 0x9c7   : > { %v2377_v31 = vpop.eup %2376 }
 0x9c8   : > { %v1516_v33 = vmul.f32 %v2377_v31, %v2367_v5 }
 0x9c9   : > { %v1725_v34 = vpop.xlane.xlu0 %1724 }
 0x9ca   : > { %2380 = vrcp.f32 %v1725_v34  ;;  %v1517_v35 = vpack.c.bf16 %v1516_v33, %v1516_v33 }
 0x9cc   : > { %2239 = vmatmul.mubr.msk.bf16.vlgmr.msra.gmra.mxu1 %vm530_vm4, %v1517_v35 }
 0x9cd   : > { %2249 = vmatpush3.bf16.msra.mxu1 %v1627_v36  ;;  %2250 = vmatprep.mubr.msk.bf16.mxu1 %vm2393_vm0, %v2392_v1 }
 0x9ce   : > { %2260 = vmatprep.subr.bf16.mxu1 %v2392_v1 }
 0x9cf   : > { %v2379_v15 = vpop.eup %2378 }
 0x9d0   : > { %v1622_v37 = vmul.f32 %v2379_v15, %v2369_v11 }
 0x9d1   : > { %v1832_v16 = vpop.xlane.xlu1 %1831 }
 0x9d2   : > { %2382 = vrcp.f32 %v1832_v16  ;;  %v1623_v38 = vpack.c.bf16 %v1622_v37, %v1622_v37 }
 0x9d4   : > { %2251 = vmatmul.mubr.msk.bf16.vlgmr.msra.gmra.mxu1 %vm530_vm4, %v1623_v38 }
 0x9d5   : > { %2261 = vmatpush3.bf16.msra.mxu1 %v1732_v39  ;;  %2262 = vmatprep.mubr.msk.bf16.mxu1 %vm2393_vm0, %v2392_v1 }
 0x9d6   : > { %2272 = vmatprep.subr.bf16.mxu1 %v2392_v1 }
 0x9d7   : > { %v2381_v19 = vpop.eup %2380 }
 0x9d8   : > { %v1727_v40 = vmul.f32 %v2381_v19, %v2371_v14 }
 0x9da   : > { %v1728_v41 = vpack.c.bf16 %v1727_v40, %v1727_v40 }
 0x9dc   : > { %2263 = vmatmul.mubr.msk.bf16.vlgmr.msra.gmra.mxu1 %vm530_vm4, %v1728_v41 }
 0x9dd   : > { %2273 = vmatpush3.bf16.msra.mxu1 %v1839_v42  ;;  %2274 = vmatprep.mubr.msk.bf16.mxu1 %vm2393_vm0, %v2392_v1 }
 0x9df   : > { %v2383_v43 = vpop.eup %2382 }
 0x9e0   : > { %v1834_v23 = vmul.f32 %v2383_v43, %v2373_v18 }
 0x9e2   : > { %v1835_v44 = vpack.c.bf16 %v1834_v23, %v1834_v23 }
 0x9e4   : > { %2275 = vmatmul.mubr.msk.bf16.vlgmr.msra.gmra.mxu1 %vm530_vm4, %v1835_v44 }
 0xa84   : > { %v1451_v45 = vpop.f32.mrf.mxu1 }
 0xa86   : > { %v2228_v46 = vpop.f32.mrf.mxu1 }
 0xa88   : > { %v1454_v47 = vpop.f32.mrf.mxu1 }
 0xa8a   : > { %v2229_v48 = vpop.f32.mrf.mxu1 }
 0xa8c   : > { %v1557_v49 = vpop.f32.mrf.mxu1 }
 0xa8d   : > { %1882 = vrot.lane.b32.xlu0 %v1557_v49, %s2396_s29 }
 0xa8e   : > { %v2240_v50 = vpop.f32.mrf.mxu1 }
 0xa90   : > { %v1560_v51 = vpop.f32.mrf.mxu1 }
 0xa92   : > { %v2241_v52 = vpop.f32.mrf.mxu1 }
 0xa94   : > { %v1663_v25 = vpop.f32.mrf.mxu1 }
 0xa96   : > { %v2252_v53 = vpop.f32.mrf.mxu1 }
 0xa98   : > { %v1666_v21 = vpop.f32.mrf.mxu1 }
 0xa9a   : > { %v2253_v1 = vpop.f32.mrf.mxu1 }
 0xa9c   : > { %v1768_v32 = vpop.f32.mrf.mxu1 }
 0xa9d   : > { %1886 = vrot.lane.b32.xlu1 %v1768_v32, %s2395_s15  ;;  %s353_s15 = scalar_lea.vmem %s2834_s8, %s2066_s24 }
 0xa9e   : > { %v2264_v54 = vpop.f32.mrf.mxu1 }
 0xaa0   : > { %v1771_v55 = vpop.f32.mrf.mxu1 }
 0xaa1   : > { %1890 = vrot.lane.b32.xlu1 %v1451_v45, %s2394_s19 }
 0xaa2   : > { %v2265_v56 = vpop.f32.mrf.mxu1 }
 0xaa4   : > { %v1875_v57 = vpop.f32.mrf.mxu1 }
 0xaa5   : > { %1894 = vrot.lane.b32.xlu0 %v1875_v57, %s2396_s29 }
 0xaa6   : > { %v2276_v58 = vpop.f32.mrf.mxu1 }
 0xaa8   : > { %v1878_v59 = vpop.f32.mrf.mxu1 }
 0xaaa   : > { %v2277_v61 = vpop.f32.mrf.mxu1 }
 0xaff   : > { %v1883_v62 = vpop.permute.xlu0 %1882 }
 0xb00   : > { %v1897_v0 = vsel %vm376_vm1, %v2773_v28, %v1883_v62 }
 0xb0f   : > { %v1887_v63 = vpop.permute.xlu1 %1886 }
 0xb10   : > { %v1898_v2 = vsel %vm1050_vm8, %v1897_v0, %v1887_v63 }
 0xb13   : > { %v1891_v3 = vpop.permute.xlu1 %1890 }
 0xb14   : > { %v1899_v60 = vsel %vm1052_vm9, %v1898_v2, %v1891_v3 }
 0xb15   : > { %1901 = vst [vmem:[%s353_s15] sm:$0xff] %v1899_v60 }
 0xb17   : > { %v1895_v4 = vpop.permute.xlu0 %1894 }
 0xb18   : > { %v1900_v5 = vsel %vm376_vm1, %v1663_v25, %v1895_v4 }
 0xb19   : > { %1902 = vst.msk [vmem:[%s353_s15 + $0x8] sm:$0xff] %vm1050_vm8, %v1900_v5 }
 0xb1a PF: > { %s18_s27 = sadd.s32 1, %s2390_s27  }
 0xb1b   : > { %p15_p4 = scmp.ge.s32.totalorder %s18_s27, 4  }
 0xb1d   :  { %17 = sbr.rel (!%p15_p4) target bundleno = 1 (0x1), region = 91 }

</bundles_post_ra>
